<compile_context>
chip_gen: v7x
topology: tpu7x:2x2x1
jax: 0.10.0
libtpu: 0.0.40
codegen_flags: <defaults>
</compile_context>

<pallas_src>
import math
import functools

import jax
import jax.numpy as jnp
from jax import lax
from jax.experimental import pallas as pl
from jax.experimental.pallas import tpu as pltpu


# ----------------------------- kernel helpers ------------------------------

def _layer_norm(x, g, b, eps=1e-5):
    mu = jnp.mean(x, axis=-1, keepdims=True)
    var = jnp.mean((x - mu) ** 2, axis=-1, keepdims=True)
    return (x - mu) * lax.rsqrt(var + eps) * g + b


def _gelu_exact(x):
    # PyTorch activation='gelu' default (approximate='none') is erf-based.
    return 0.5 * x * (1.0 + lax.erf(x * (1.0 / math.sqrt(2.0))))


def _mm(a_bf16, w_bf16):
    # (M, K) @ (K, N), bf16 MXU inputs, f32 accumulation. Weights are already
    # stored (in_features, out_features), so no RHS transpose/relayout.
    return jnp.dot(a_bf16, w_bf16, preferred_element_type=jnp.float32)


# --------------------- fused transformer-stack kernel -----------------------

def decoder_kernel(num_heads,
                   x_ref,       # (Bt, S, D)   f32   embedded input block
                   wqkv_ref,    # (1, 3, D, D) bf16  (in, out) layout
                   wo_ref,      # (1, D, D)    bf16  (in, out)
                   w1_ref,      # (1, D, F)    bf16  (in, out)
                   w2_ref,      # (1, F, D)    bf16  (in, out)
                   bvec_ref,    # (1, 9, D)    f32   packed per-layer vectors
                   bf1_ref,     # (1, 1, F)    f32
                   h_out_ref,   # (Bt, S, D)   bf16  final hidden states
                   act_ref,     # VMEM (Bt*S, D) f32 activation accumulator
                   mask_ref):   # VMEM (S, S)   f32  causal mask (reused)
    layer = pl.program_id(1)
    n_layers = pl.num_programs(1)

    Bt, S, D = x_ref.shape
    H = num_heads
    Dh = D // H
    R = Bt * S
    scale = 1.0 / math.sqrt(Dh)

    # First layer of this batch block: load input + build causal mask once.
    @pl.when(layer == 0)
    def _():
        act_ref[...] = x_ref[...].reshape(R, D).astype(jnp.float32)
        row = lax.broadcasted_iota(jnp.int32, (S, S), 0)
        col = lax.broadcasted_iota(jnp.int32, (S, S), 1)
        mask_ref[...] = jnp.where(col > row, -1e30, 0.0).astype(jnp.float32)

    x = act_ref[...]                              # (R, D) f32
    xb = x.astype(jnp.bfloat16)                   # cast once, reused for q/k/v

    # Packed per-layer vectors: [bq, bk, bv, bo, g1, b1, bf2, g2, b2]
    bv = bvec_ref[0]                              # (9, D) f32
    bq, bk, bvv = bv[0:1], bv[1:2], bv[2:3]
    bo = bv[3:4]
    g1, b1 = bv[4:5], bv[5:6]
    bf2 = bv[6:7]
    g2, b2 = bv[7:8], bv[8:9]

    # ----- multi-head self attention -----
    q = (_mm(xb, wqkv_ref[0, 0]) + bq) * scale    # 1/sqrt(Dh) folded into q
    k = _mm(xb, wqkv_ref[0, 1]) + bk
    v = _mm(xb, wqkv_ref[0, 2]) + bvv

    q3 = q.reshape(Bt, S, D).astype(jnp.bfloat16)
    k3 = k.reshape(Bt, S, D).astype(jnp.bfloat16)
    v3 = v.reshape(Bt, S, D).astype(jnp.bfloat16)
    neg = mask_ref[...][None]                     # (1, S, S)

    # TODO(synk): for production S / H, switch to a head-batched KV-block
    # online-softmax loop (flash) so only (Sq_tile, Skv_tile) scores are live.
    ctx_heads = []
    for h in range(H):                            # static lane slices per head
        sl = slice(h * Dh, (h + 1) * Dh)
        qh, kh, vh = q3[:, :, sl], k3[:, :, sl], v3[:, :, sl]
        s = lax.dot_general(qh, kh, (((2,), (2,)), ((0,), (0,))),
                            preferred_element_type=jnp.float32)   # (Bt, S, S)
        s = s + neg
        s = s - jnp.max(s, axis=-1, keepdims=True)
        p = jnp.exp(s)                                            # f32 softmax
        p = p * pl.reciprocal(jnp.sum(p, axis=-1, keepdims=True), approx=True)
        ctx_heads.append(
            lax.dot_general(p.astype(jnp.bfloat16), vh,
                            (((2,), (1,)), ((0,), (0,))),
                            preferred_element_type=jnp.float32))  # (Bt, S, Dh)
    attn = jnp.concatenate(ctx_heads, axis=-1).reshape(R, D)
    attn = _mm(attn.astype(jnp.bfloat16), wo_ref[0]) + bo         # out_proj

    # post-LN residual (nn.TransformerEncoderLayer default norm_first=False)
    x1 = _layer_norm(x + attn, g1, b1)

    # ----- feed forward -----
    hdn = _gelu_exact(_mm(x1.astype(jnp.bfloat16), w1_ref[0]) + bf1_ref[0])
    ff = _mm(hdn.astype(jnp.bfloat16), w2_ref[0]) + bf2
    x2 = _layer_norm(x1 + ff, g2, b2)

    act_ref[...] = x2

    @pl.when(layer == n_layers - 1)
    def _():
        h_out_ref[...] = x2.reshape(Bt, S, D).astype(h_out_ref.dtype)


# ------------------------ tied logits-projection kernel ----------------------

def logits_kernel(h_ref, e_ref, o_ref):
    # h_ref: (TM, D) bf16, e_ref: (D, TV) bf16 (tied embedding, pre-transposed)
    o_ref[...] = jnp.dot(h_ref[...], e_ref[...],
                         preferred_element_type=jnp.float32).astype(o_ref.dtype)


# ------------------------------ glue (JAX) ----------------------------------

def positional_encoding(max_len, d_model):
    pos = jnp.arange(max_len, dtype=jnp.float32)[:, None]
    div = jnp.exp(jnp.arange(0, d_model, 2, dtype=jnp.float32)
                  * (-math.log(10000.0) / d_model))
    pe = jnp.zeros((max_len, d_model), jnp.float32)
    pe = pe.at[:, 0::2].set(jnp.sin(pos * div))
    pe = pe.at[:, 1::2].set(jnp.cos(pos * div))
    return pe


def init_params(key, vocab_size, d_model, num_layers, d_ff, num_heads):
    del num_heads  # head count only affects runtime reshaping, not shapes
    std = 0.02
    out_proj_std = 0.02 / math.sqrt(2 * num_layers)
    D, F, L = d_model, d_ff, num_layers
    k_emb, k_qkv, k_o, k_1, k_2 = jax.random.split(key, 5)

    # Packed per-layer vectors: [bq, bk, bv, bo, g1, b1, bf2, g2, b2]
    bvecs = jnp.zeros((L, 9, D), jnp.float32)
    bvecs = bvecs.at[:, 4, :].set(1.0)   # g1 (LayerNorm1 gamma)
    bvecs = bvecs.at[:, 7, :].set(1.0)   # g2 (LayerNorm2 gamma)

    # All matmul weights stored pre-transposed to (in_features, out_features)
    # and in bf16 (halves DMA / VMEM; MXU accumulates in f32).
    return dict(
        embed=std * jax.random.normal(k_emb, (vocab_size, D), jnp.float32),
        wqkv=(std * jax.random.normal(k_qkv, (L, 3, D, D), jnp.float32)
              ).astype(jnp.bfloat16),
        wo=(out_proj_std * jax.random.normal(k_o, (L, D, D), jnp.float32)
            ).astype(jnp.bfloat16),
        w1=(std * jax.random.normal(k_1, (L, D, F), jnp.float32)
            ).astype(jnp.bfloat16),
        w2=(std * jax.random.normal(k_2, (L, F, D), jnp.float32)
            ).astype(jnp.bfloat16),
        bvecs=bvecs,
        bf1=jnp.zeros((L, 1, F), jnp.float32),
    )


def my_decoder_forward(params, tokens, num_heads, max_seq_length,
                       batch_tile=None):
    B, S = tokens.shape
    V, D = params['embed'].shape
    L = params['wqkv'].shape[0]
    F = params['w1'].shape[2]
    assert D % num_heads == 0

    # Fold the whole (toy) batch into one block; production should pick a
    # B_tile that amortizes weight DMA while leaving >=2 parallel blocks for
    # megacore and fitting v7x's 64 MiB VMEM.
    if batch_tile is None:
        batch_tile = B
    assert B % batch_tile == 0

    # Embedding lookup + positional encoding (host-side gather).
    pe = positional_encoding(max_seq_length, D)
    h = (jnp.take(params['embed'], tokens, axis=0) + pe[None, :S]
         ).astype(jnp.float32)

    # ---------------- stage 1: transformer stack ----------------
    w_bytes = (4 * D * D + 2 * D * F) * 2              # bf16 per-layer weights
    vec_bytes = (9 * D + F) * 4
    io_bytes = batch_tile * S * D * (4 + 2)            # f32 in + bf16 out blocks
    scr_bytes = (batch_tile * S * D + S * S) * 4
    stack_vmem = min(64 << 20,
                     max(32 << 20,
                         4 * (w_bytes + vec_bytes + io_bytes) + scr_bytes))

    hidden = pl.pallas_call(
        functools.partial(decoder_kernel, num_heads),
        out_shape=jax.ShapeDtypeStruct((B, S, D), jnp.bfloat16),
        grid=(B // batch_tile, L),                     # layer axis innermost
        in_specs=[
            pl.BlockSpec((batch_tile, S, D), lambda b, l: (b, 0, 0)),   # x
            pl.BlockSpec((1, 3, D, D), lambda b, l: (l, 0, 0, 0)),      # wqkv
            pl.BlockSpec((1, D, D), lambda b, l: (l, 0, 0)),            # wo
            pl.BlockSpec((1, D, F), lambda b, l: (l, 0, 0)),            # w1
            pl.BlockSpec((1, F, D), lambda b, l: (l, 0, 0)),            # w2
            pl.BlockSpec((1, 9, D), lambda b, l: (l, 0, 0)),            # bvecs
            pl.BlockSpec((1, 1, F), lambda b, l: (l, 0, 0)),            # bf1
        ],
        out_specs=pl.BlockSpec((batch_tile, S, D), lambda b, l: (b, 0, 0)),
        scratch_shapes=[pltpu.VMEM((batch_tile * S, D), jnp.float32),
                        pltpu.VMEM((S, S), jnp.float32)],
        compiler_params=pltpu.CompilerParams(
            dimension_semantics=("parallel", "arbitrary"),
            vmem_limit_bytes=int(stack_vmem)),
    )(h, params['wqkv'], params['wo'], params['w1'], params['w2'],
      params['bvecs'], params['bf1'])

    # ---------------- stage 2: tied logits projection ----------------
    rows = B * S
    tm = rows if rows <= 256 else 256
    tv = V if V <= 512 else 512
    assert rows % tm == 0 and V % tv == 0

    emb_t = params['embed'].T.astype(jnp.bfloat16)     # (D, V), tied weight

    logit_vmem = min(64 << 20,
                     max(32 << 20,
                         4 * (tm * D * 2 + D * tv * 2 + tm * tv * 4)))
    logits = pl.pallas_call(
        logits_kernel,
        out_shape=jax.ShapeDtypeStruct((rows, V), jnp.float32),
        grid=(rows // tm, V // tv),
        in_specs=[pl.BlockSpec((tm, D), lambda i, j: (i, 0)),
                  pl.BlockSpec((D, tv), lambda i, j: (0, j))],
        out_specs=pl.BlockSpec((tm, tv), lambda i, j: (i, j)),
        compiler_params=pltpu.CompilerParams(
            dimension_semantics=("parallel", "parallel"),
            vmem_limit_bytes=int(logit_vmem)),
    )(hidden.reshape(rows, D), emb_t)

    return logits.reshape(B, S, V)


# --------------------------------- main --------------------------------------

if __name__ == "__main__":
    vocab_size = 64
    max_seq_length = 16
    d_model = 32
    num_layers = 2
    d_ff = 64
    num_heads = 4
    B, S = 2, 8

    key = jax.random.PRNGKey(0)
    pkey, tkey = jax.random.split(key)
    params = init_params(pkey, vocab_size, d_model, num_layers, d_ff, num_heads)
    tokens = jax.random.randint(tkey, (B, S), 0, vocab_size, dtype=jnp.int32)

    logits = my_decoder_forward(params, tokens, num_heads, max_seq_length)
    logits = jax.block_until_ready(logits)

    assert logits.shape == (B, S, vocab_size), logits.shape
    assert bool(jnp.all(jnp.isfinite(logits)))
    print("KERNEL_OK")
</pallas_src>

<mosaic_0001>
module attributes {stable_mosaic.version = 11 : i64} {
  func.func @decoder_kernel(%arg0: i32, %arg1: i32, %arg2: memref<2x8x32xf32, #tpu.memory_space<vmem>>, %arg3: memref<1x3x32x32xbf16, #tpu.memory_space<vmem>>, %arg4: memref<1x32x32xbf16, #tpu.memory_space<vmem>>, %arg5: memref<1x32x64xbf16, #tpu.memory_space<vmem>>, %arg6: memref<1x64x32xbf16, #tpu.memory_space<vmem>>, %arg7: memref<1x9x32xf32, #tpu.memory_space<vmem>>, %arg8: memref<1x1x64xf32, #tpu.memory_space<vmem>>, %arg9: memref<2x8x32xbf16, #tpu.memory_space<vmem>>, %arg10: memref<16x32xf32, #tpu.memory_space<vmem>>, %arg11: memref<8x8xf32, #tpu.memory_space<vmem>>) attributes {dimension_semantics = [#tpu.dimension_semantics<parallel>, #tpu.dimension_semantics<arbitrary>], iteration_bounds = array<i64: 1, 2>, scalar_prefetch = 0 : i64, scratch_operands = 2 : i64, tpu.core_type = #tpu.core_type<tc>, window_params = [{transform_indices = @transform_0, window_bounds = array<i64: 2, 8, 32>}, {transform_indices = @transform_1, window_bounds = array<i64: 1, 3, 32, 32>}, {transform_indices = @transform_2, window_bounds = array<i64: 1, 32, 32>}, {transform_indices = @transform_3, window_bounds = array<i64: 1, 32, 64>}, {transform_indices = @transform_4, window_bounds = array<i64: 1, 64, 32>}, {transform_indices = @transform_5, window_bounds = array<i64: 1, 9, 32>}, {transform_indices = @transform_6, window_bounds = array<i64: 1, 1, 64>}, {transform_indices = @transform_7, window_bounds = array<i64: 2, 8, 32>}]} {
    %c0_i32 = arith.constant 0 : i32
    %0 = arith.cmpi eq, %arg1, %c0_i32 : i32
    %1 = arith.extui %0 : i1 to i32
    %c0_i32_0 = arith.constant 0 : i32
    %2 = arith.cmpi ne, %1, %c0_i32_0 : i32
    scf.if %2 {
      %c0_67 = arith.constant 0 : index
      %c0_68 = arith.constant 0 : index
      %c0_69 = arith.constant 0 : index
      %193 = vector.load %arg2[%c0_67, %c0_68, %c0_69] : memref<2x8x32xf32, #tpu.memory_space<vmem>>, vector<2x8x32xf32>
      %194 = vector.shape_cast %193 : vector<2x8x32xf32> to vector<16x32xf32>
      %c0_70 = arith.constant 0 : index
      %c0_71 = arith.constant 0 : index
      %195 = vector.load %arg10[%c0_70, %c0_71] : memref<16x32xf32, #tpu.memory_space<vmem>>, vector<16x32xf32>
      tpu.vector_store %arg10[%c0_70, %c0_71], %194 {strides = array<i32>} : memref<16x32xf32, #tpu.memory_space<vmem>>, vector<16x32xf32>,
      %196 = tpu.iota {dimensions = array<i32: 0>} : vector<8x8xi32>
      %197 = tpu.iota {dimensions = array<i32: 1>} : vector<8x8xi32>
      %198 = arith.cmpi sgt, %197, %196 : vector<8x8xi32>
      %cst_72 = arith.constant -1.000000e+30 : f32
      %cst_73 = arith.constant 0.000000e+00 : f32
      %199 = vector.broadcast %cst_72 : f32 to vector<8x8xf32>
      %200 = vector.broadcast %cst_73 : f32 to vector<8x8xf32>
      %201 = arith.select %198, %199, %200 : vector<8x8xi1>, vector<8x8xf32>
      %c0_74 = arith.constant 0 : index
      %c0_75 = arith.constant 0 : index
      %202 = vector.load %arg11[%c0_74, %c0_75] : memref<8x8xf32, #tpu.memory_space<vmem>>, vector<8x8xf32>
      tpu.vector_store %arg11[%c0_74, %c0_75], %201 {strides = array<i32>} : memref<8x8xf32, #tpu.memory_space<vmem>>, vector<8x8xf32>,
    } else {
    }
    %c0 = arith.constant 0 : index
    %c0_1 = arith.constant 0 : index
    %3 = vector.load %arg10[%c0, %c0_1] : memref<16x32xf32, #tpu.memory_space<vmem>>, vector<16x32xf32>
    %4 = arith.truncf %3 : vector<16x32xf32> to vector<16x32xbf16>
    %c0_2 = arith.constant 0 : index
    %c0_3 = arith.constant 0 : index
    %c0_4 = arith.constant 0 : index
    %5 = vector.load %arg7[%c0_2, %c0_3, %c0_4] : memref<1x9x32xf32, #tpu.memory_space<vmem>>, vector<1x9x32xf32>
    %6 = vector.shape_cast %5 : vector<1x9x32xf32> to vector<9x32xf32>
    %7 = vector.extract_strided_slice %6 {offsets = [0, 0], sizes = [1, 32], strides = [1, 1]} : vector<9x32xf32> to vector<1x32xf32>
    %8 = vector.extract_strided_slice %6 {offsets = [1, 0], sizes = [1, 32], strides = [1, 1]} : vector<9x32xf32> to vector<1x32xf32>
    %9 = vector.extract_strided_slice %6 {offsets = [2, 0], sizes = [1, 32], strides = [1, 1]} : vector<9x32xf32> to vector<1x32xf32>
    %10 = vector.extract_strided_slice %6 {offsets = [3, 0], sizes = [1, 32], strides = [1, 1]} : vector<9x32xf32> to vector<1x32xf32>
    %11 = vector.extract_strided_slice %6 {offsets = [4, 0], sizes = [1, 32], strides = [1, 1]} : vector<9x32xf32> to vector<1x32xf32>
    %12 = vector.extract_strided_slice %6 {offsets = [5, 0], sizes = [1, 32], strides = [1, 1]} : vector<9x32xf32> to vector<1x32xf32>
    %13 = vector.extract_strided_slice %6 {offsets = [6, 0], sizes = [1, 32], strides = [1, 1]} : vector<9x32xf32> to vector<1x32xf32>
    %14 = vector.extract_strided_slice %6 {offsets = [7, 0], sizes = [1, 32], strides = [1, 1]} : vector<9x32xf32> to vector<1x32xf32>
    %15 = vector.extract_strided_slice %6 {offsets = [8, 0], sizes = [1, 32], strides = [1, 1]} : vector<9x32xf32> to vector<1x32xf32>
    %c0_5 = arith.constant 0 : index
    %c0_6 = arith.constant 0 : index
    %c0_7 = arith.constant 0 : index
    %c0_8 = arith.constant 0 : index
    %16 = vector.load %arg3[%c0_5, %c0_6, %c0_7, %c0_8] : memref<1x3x32x32xbf16, #tpu.memory_space<vmem>>, vector<1x1x32x32xbf16>
    %17 = vector.shape_cast %16 : vector<1x1x32x32xbf16> to vector<32x32xbf16>
    %cst = arith.constant dense<0.000000e+00> : vector<16x32xf32>
    %18 = tpu.matmul %4, %17, %cst {dimension_numbers = #tpu.dot_dimension_numbers<[1], [0], [0], [1], [0, 0, 1, 1], [], []>} : vector<16x32xbf16>, vector<32x32xbf16>, vector<16x32xf32> -> vector<16x32xf32>
    %19 = vector.broadcast %7 : vector<1x32xf32> to vector<16x32xf32>
    %20 = arith.addf %18, %19 : vector<16x32xf32>
    %cst_9 = arith.constant 0.353553385 : f32
    %21 = vector.broadcast %cst_9 : f32 to vector<16x32xf32>
    %22 = arith.mulf %20, %21 : vector<16x32xf32>
    %c0_10 = arith.constant 0 : index
    %c1 = arith.constant 1 : index
    %c0_11 = arith.constant 0 : index
    %c0_12 = arith.constant 0 : index
    %23 = vector.load %arg3[%c0_10, %c1, %c0_11, %c0_12] : memref<1x3x32x32xbf16, #tpu.memory_space<vmem>>, vector<1x1x32x32xbf16>
    %24 = vector.shape_cast %23 : vector<1x1x32x32xbf16> to vector<32x32xbf16>
    %cst_13 = arith.constant dense<0.000000e+00> : vector<16x32xf32>
    %25 = tpu.matmul %4, %24, %cst_13 {dimension_numbers = #tpu.dot_dimension_numbers<[1], [0], [0], [1], [0, 0, 1, 1], [], []>} : vector<16x32xbf16>, vector<32x32xbf16>, vector<16x32xf32> -> vector<16x32xf32>
    %26 = vector.broadcast %8 : vector<1x32xf32> to vector<16x32xf32>
    %27 = arith.addf %25, %26 : vector<16x32xf32>
    %c0_14 = arith.constant 0 : index
    %c2 = arith.constant 2 : index
    %c0_15 = arith.constant 0 : index
    %c0_16 = arith.constant 0 : index
    %28 = vector.load %arg3[%c0_14, %c2, %c0_15, %c0_16] : memref<1x3x32x32xbf16, #tpu.memory_space<vmem>>, vector<1x1x32x32xbf16>
    %29 = vector.shape_cast %28 : vector<1x1x32x32xbf16> to vector<32x32xbf16>
    %cst_17 = arith.constant dense<0.000000e+00> : vector<16x32xf32>
    %30 = tpu.matmul %4, %29, %cst_17 {dimension_numbers = #tpu.dot_dimension_numbers<[1], [0], [0], [1], [0, 0, 1, 1], [], []>} : vector<16x32xbf16>, vector<32x32xbf16>, vector<16x32xf32> -> vector<16x32xf32>
    %31 = vector.broadcast %9 : vector<1x32xf32> to vector<16x32xf32>
    %32 = arith.addf %30, %31 : vector<16x32xf32>
    %33 = vector.shape_cast %22 : vector<16x32xf32> to vector<2x8x32xf32>
    %34 = arith.truncf %33 : vector<2x8x32xf32> to vector<2x8x32xbf16>
    %35 = vector.shape_cast %27 : vector<16x32xf32> to vector<2x8x32xf32>
    %36 = arith.truncf %35 : vector<2x8x32xf32> to vector<2x8x32xbf16>
    %37 = vector.shape_cast %32 : vector<16x32xf32> to vector<2x8x32xf32>
    %38 = arith.truncf %37 : vector<2x8x32xf32> to vector<2x8x32xbf16>
    %c0_18 = arith.constant 0 : index
    %c0_19 = arith.constant 0 : index
    %39 = vector.load %arg11[%c0_18, %c0_19] : memref<8x8xf32, #tpu.memory_space<vmem>>, vector<8x8xf32>
    %40 = vector.shape_cast %39 : vector<8x8xf32> to vector<1x8x8xf32>
    %41 = vector.extract_strided_slice %34 {offsets = [0, 0, 0], sizes = [2, 8, 8], strides = [1, 1, 1]} : vector<2x8x32xbf16> to vector<2x8x8xbf16>
    %42 = vector.extract_strided_slice %36 {offsets = [0, 0, 0], sizes = [2, 8, 8], strides = [1, 1, 1]} : vector<2x8x32xbf16> to vector<2x8x8xbf16>
    %43 = vector.extract_strided_slice %38 {offsets = [0, 0, 0], sizes = [2, 8, 8], strides = [1, 1, 1]} : vector<2x8x32xbf16> to vector<2x8x8xbf16>
    %cst_20 = arith.constant dense<0.000000e+00> : vector<2x8x8xf32>
    %44 = tpu.matmul %41, %42, %cst_20 {dimension_numbers = #tpu.dot_dimension_numbers<[2], [2], [1], [1], [0, 0, 0, 1, 1, 1], [0], [0]>} : vector<2x8x8xbf16>, vector<2x8x8xbf16>, vector<2x8x8xf32> -> vector<2x8x8xf32>
    %45 = vector.broadcast %40 : vector<1x8x8xf32> to vector<2x8x8xf32>
    %46 = arith.addf %44, %45 : vector<2x8x8xf32>
    %cst_21 = arith.constant dense<0xFF800000> : vector<2x8xf32>
    %47 = vector.multi_reduction <maximumf>, %46, %cst_21 [2] : vector<2x8x8xf32> to vector<2x8xf32>
    %48 = vector.shape_cast %47 : vector<2x8xf32> to vector<2x8x1xf32>
    %49 = vector.broadcast %48 : vector<2x8x1xf32> to vector<2x8x8xf32>
    %50 = arith.subf %46, %49 : vector<2x8x8xf32>
    %51 = math.exp %50 : vector<2x8x8xf32>
    %cst_22 = arith.constant dense<0.000000e+00> : vector<2x8xf32>
    %52 = vector.multi_reduction <add>, %51, %cst_22 [2] : vector<2x8x8xf32> to vector<2x8xf32>
    %53 = vector.shape_cast %52 : vector<2x8xf32> to vector<2x8x1xf32>
    %54 = tpu.reciprocal %53 {approx = true} : vector<2x8x1xf32> -> vector<2x8x1xf32>
    %55 = vector.broadcast %54 : vector<2x8x1xf32> to vector<2x8x8xf32>
    %56 = arith.mulf %51, %55 : vector<2x8x8xf32>
    %57 = arith.truncf %56 : vector<2x8x8xf32> to vector<2x8x8xbf16>
    %cst_23 = arith.constant dense<0.000000e+00> : vector<2x8x8xf32>
    %58 = tpu.matmul %57, %43, %cst_23 {dimension_numbers = #tpu.dot_dimension_numbers<[2], [1], [1], [2], [0, 0, 0, 1, 1, 2], [0], [0]>} : vector<2x8x8xbf16>, vector<2x8x8xbf16>, vector<2x8x8xf32> -> vector<2x8x8xf32>
    %59 = vector.extract_strided_slice %34 {offsets = [0, 0, 8], sizes = [2, 8, 8], strides = [1, 1, 1]} : vector<2x8x32xbf16> to vector<2x8x8xbf16>
    %60 = vector.extract_strided_slice %36 {offsets = [0, 0, 8], sizes = [2, 8, 8], strides = [1, 1, 1]} : vector<2x8x32xbf16> to vector<2x8x8xbf16>
    %61 = vector.extract_strided_slice %38 {offsets = [0, 0, 8], sizes = [2, 8, 8], strides = [1, 1, 1]} : vector<2x8x32xbf16> to vector<2x8x8xbf16>
    %cst_24 = arith.constant dense<0.000000e+00> : vector<2x8x8xf32>
    %62 = tpu.matmul %59, %60, %cst_24 {dimension_numbers = #tpu.dot_dimension_numbers<[2], [2], [1], [1], [0, 0, 0, 1, 1, 1], [0], [0]>} : vector<2x8x8xbf16>, vector<2x8x8xbf16>, vector<2x8x8xf32> -> vector<2x8x8xf32>
    %63 = vector.broadcast %40 : vector<1x8x8xf32> to vector<2x8x8xf32>
    %64 = arith.addf %62, %63 : vector<2x8x8xf32>
    %cst_25 = arith.constant dense<0xFF800000> : vector<2x8xf32>
    %65 = vector.multi_reduction <maximumf>, %64, %cst_25 [2] : vector<2x8x8xf32> to vector<2x8xf32>
    %66 = vector.shape_cast %65 : vector<2x8xf32> to vector<2x8x1xf32>
    %67 = vector.broadcast %66 : vector<2x8x1xf32> to vector<2x8x8xf32>
    %68 = arith.subf %64, %67 : vector<2x8x8xf32>
    %69 = math.exp %68 : vector<2x8x8xf32>
    %cst_26 = arith.constant dense<0.000000e+00> : vector<2x8xf32>
    %70 = vector.multi_reduction <add>, %69, %cst_26 [2] : vector<2x8x8xf32> to vector<2x8xf32>
    %71 = vector.shape_cast %70 : vector<2x8xf32> to vector<2x8x1xf32>
    %72 = tpu.reciprocal %71 {approx = true} : vector<2x8x1xf32> -> vector<2x8x1xf32>
    %73 = vector.broadcast %72 : vector<2x8x1xf32> to vector<2x8x8xf32>
    %74 = arith.mulf %69, %73 : vector<2x8x8xf32>
    %75 = arith.truncf %74 : vector<2x8x8xf32> to vector<2x8x8xbf16>
    %cst_27 = arith.constant dense<0.000000e+00> : vector<2x8x8xf32>
    %76 = tpu.matmul %75, %61, %cst_27 {dimension_numbers = #tpu.dot_dimension_numbers<[2], [1], [1], [2], [0, 0, 0, 1, 1, 2], [0], [0]>} : vector<2x8x8xbf16>, vector<2x8x8xbf16>, vector<2x8x8xf32> -> vector<2x8x8xf32>
    %77 = vector.extract_strided_slice %34 {offsets = [0, 0, 16], sizes = [2, 8, 8], strides = [1, 1, 1]} : vector<2x8x32xbf16> to vector<2x8x8xbf16>
    %78 = vector.extract_strided_slice %36 {offsets = [0, 0, 16], sizes = [2, 8, 8], strides = [1, 1, 1]} : vector<2x8x32xbf16> to vector<2x8x8xbf16>
    %79 = vector.extract_strided_slice %38 {offsets = [0, 0, 16], sizes = [2, 8, 8], strides = [1, 1, 1]} : vector<2x8x32xbf16> to vector<2x8x8xbf16>
    %cst_28 = arith.constant dense<0.000000e+00> : vector<2x8x8xf32>
    %80 = tpu.matmul %77, %78, %cst_28 {dimension_numbers = #tpu.dot_dimension_numbers<[2], [2], [1], [1], [0, 0, 0, 1, 1, 1], [0], [0]>} : vector<2x8x8xbf16>, vector<2x8x8xbf16>, vector<2x8x8xf32> -> vector<2x8x8xf32>
    %81 = vector.broadcast %40 : vector<1x8x8xf32> to vector<2x8x8xf32>
    %82 = arith.addf %80, %81 : vector<2x8x8xf32>
    %cst_29 = arith.constant dense<0xFF800000> : vector<2x8xf32>
    %83 = vector.multi_reduction <maximumf>, %82, %cst_29 [2] : vector<2x8x8xf32> to vector<2x8xf32>
    %84 = vector.shape_cast %83 : vector<2x8xf32> to vector<2x8x1xf32>
    %85 = vector.broadcast %84 : vector<2x8x1xf32> to vector<2x8x8xf32>
    %86 = arith.subf %82, %85 : vector<2x8x8xf32>
    %87 = math.exp %86 : vector<2x8x8xf32>
    %cst_30 = arith.constant dense<0.000000e+00> : vector<2x8xf32>
    %88 = vector.multi_reduction <add>, %87, %cst_30 [2] : vector<2x8x8xf32> to vector<2x8xf32>
    %89 = vector.shape_cast %88 : vector<2x8xf32> to vector<2x8x1xf32>
    %90 = tpu.reciprocal %89 {approx = true} : vector<2x8x1xf32> -> vector<2x8x1xf32>
    %91 = vector.broadcast %90 : vector<2x8x1xf32> to vector<2x8x8xf32>
    %92 = arith.mulf %87, %91 : vector<2x8x8xf32>
    %93 = arith.truncf %92 : vector<2x8x8xf32> to vector<2x8x8xbf16>
    %cst_31 = arith.constant dense<0.000000e+00> : vector<2x8x8xf32>
    %94 = tpu.matmul %93, %79, %cst_31 {dimension_numbers = #tpu.dot_dimension_numbers<[2], [1], [1], [2], [0, 0, 0, 1, 1, 2], [0], [0]>} : vector<2x8x8xbf16>, vector<2x8x8xbf16>, vector<2x8x8xf32> -> vector<2x8x8xf32>
    %95 = vector.extract_strided_slice %34 {offsets = [0, 0, 24], sizes = [2, 8, 8], strides = [1, 1, 1]} : vector<2x8x32xbf16> to vector<2x8x8xbf16>
    %96 = vector.extract_strided_slice %36 {offsets = [0, 0, 24], sizes = [2, 8, 8], strides = [1, 1, 1]} : vector<2x8x32xbf16> to vector<2x8x8xbf16>
    %97 = vector.extract_strided_slice %38 {offsets = [0, 0, 24], sizes = [2, 8, 8], strides = [1, 1, 1]} : vector<2x8x32xbf16> to vector<2x8x8xbf16>
    %cst_32 = arith.constant dense<0.000000e+00> : vector<2x8x8xf32>
    %98 = tpu.matmul %95, %96, %cst_32 {dimension_numbers = #tpu.dot_dimension_numbers<[2], [2], [1], [1], [0, 0, 0, 1, 1, 1], [0], [0]>} : vector<2x8x8xbf16>, vector<2x8x8xbf16>, vector<2x8x8xf32> -> vector<2x8x8xf32>
    %99 = vector.broadcast %40 : vector<1x8x8xf32> to vector<2x8x8xf32>
    %100 = arith.addf %98, %99 : vector<2x8x8xf32>
    %cst_33 = arith.constant dense<0xFF800000> : vector<2x8xf32>
    %101 = vector.multi_reduction <maximumf>, %100, %cst_33 [2] : vector<2x8x8xf32> to vector<2x8xf32>
    %102 = vector.shape_cast %101 : vector<2x8xf32> to vector<2x8x1xf32>
    %103 = vector.broadcast %102 : vector<2x8x1xf32> to vector<2x8x8xf32>
    %104 = arith.subf %100, %103 : vector<2x8x8xf32>
    %105 = math.exp %104 : vector<2x8x8xf32>
    %cst_34 = arith.constant dense<0.000000e+00> : vector<2x8xf32>
    %106 = vector.multi_reduction <add>, %105, %cst_34 [2] : vector<2x8x8xf32> to vector<2x8xf32>
    %107 = vector.shape_cast %106 : vector<2x8xf32> to vector<2x8x1xf32>
    %108 = tpu.reciprocal %107 {approx = true} : vector<2x8x1xf32> -> vector<2x8x1xf32>
    %109 = vector.broadcast %108 : vector<2x8x1xf32> to vector<2x8x8xf32>
    %110 = arith.mulf %105, %109 : vector<2x8x8xf32>
    %111 = arith.truncf %110 : vector<2x8x8xf32> to vector<2x8x8xbf16>
    %cst_35 = arith.constant dense<0.000000e+00> : vector<2x8x8xf32>
    %112 = tpu.matmul %111, %97, %cst_35 {dimension_numbers = #tpu.dot_dimension_numbers<[2], [1], [1], [2], [0, 0, 0, 1, 1, 2], [0], [0]>} : vector<2x8x8xbf16>, vector<2x8x8xbf16>, vector<2x8x8xf32> -> vector<2x8x8xf32>
    %113 = tpu.concatenate %58, %76, %94, %112 in 2 : vector<2x8x8xf32>, vector<2x8x8xf32>, vector<2x8x8xf32>, vector<2x8x8xf32> -> vector<2x8x32xf32>
    %114 = vector.shape_cast %113 : vector<2x8x32xf32> to vector<16x32xf32>
    %115 = arith.truncf %114 : vector<16x32xf32> to vector<16x32xbf16>
    %c0_36 = arith.constant 0 : index
    %c0_37 = arith.constant 0 : index
    %c0_38 = arith.constant 0 : index
    %116 = vector.load %arg4[%c0_36, %c0_37, %c0_38] : memref<1x32x32xbf16, #tpu.memory_space<vmem>>, vector<1x32x32xbf16>
    %117 = vector.shape_cast %116 : vector<1x32x32xbf16> to vector<32x32xbf16>
    %cst_39 = arith.constant dense<0.000000e+00> : vector<16x32xf32>
    %118 = tpu.matmul %115, %117, %cst_39 {dimension_numbers = #tpu.dot_dimension_numbers<[1], [0], [0], [1], [0, 0, 1, 1], [], []>} : vector<16x32xbf16>, vector<32x32xbf16>, vector<16x32xf32> -> vector<16x32xf32>
    %119 = vector.broadcast %10 : vector<1x32xf32> to vector<16x32xf32>
    %120 = arith.addf %118, %119 : vector<16x32xf32>
    %121 = arith.addf %3, %120 : vector<16x32xf32>
    %cst_40 = arith.constant dense<0.000000e+00> : vector<16xf32>
    %122 = vector.multi_reduction <add>, %121, %cst_40 [1] : vector<16x32xf32> to vector<16xf32>
    %123 = vector.shape_cast %122 : vector<16xf32> to vector<16x1xf32>
    %cst_41 = arith.constant 3.200000e+01 : f32
    %124 = vector.broadcast %cst_41 : f32 to vector<16x1xf32>
    %125 = arith.divf %123, %124 : vector<16x1xf32>
    %126 = vector.broadcast %125 : vector<16x1xf32> to vector<16x32xf32>
    %127 = arith.subf %121, %126 : vector<16x32xf32>
    %128 = arith.mulf %127, %127 : vector<16x32xf32>
    %cst_42 = arith.constant dense<0.000000e+00> : vector<16xf32>
    %129 = vector.multi_reduction <add>, %128, %cst_42 [1] : vector<16x32xf32> to vector<16xf32>
    %130 = vector.shape_cast %129 : vector<16xf32> to vector<16x1xf32>
    %cst_43 = arith.constant 3.200000e+01 : f32
    %131 = vector.broadcast %cst_43 : f32 to vector<16x1xf32>
    %132 = arith.divf %130, %131 : vector<16x1xf32>
    %133 = vector.broadcast %125 : vector<16x1xf32> to vector<16x32xf32>
    %134 = arith.subf %121, %133 : vector<16x32xf32>
    %cst_44 = arith.constant 9.99999974E-6 : f32
    %135 = vector.broadcast %cst_44 : f32 to vector<16x1xf32>
    %136 = arith.addf %132, %135 : vector<16x1xf32>
    %137 = math.rsqrt %136 : vector<16x1xf32>
    %138 = vector.broadcast %137 : vector<16x1xf32> to vector<16x32xf32>
    %139 = arith.mulf %134, %138 : vector<16x32xf32>
    %140 = vector.broadcast %11 : vector<1x32xf32> to vector<16x32xf32>
    %141 = arith.mulf %139, %140 : vector<16x32xf32>
    %142 = vector.broadcast %12 : vector<1x32xf32> to vector<16x32xf32>
    %143 = arith.addf %141, %142 : vector<16x32xf32>
    %144 = arith.truncf %143 : vector<16x32xf32> to vector<16x32xbf16>
    %c0_45 = arith.constant 0 : index
    %c0_46 = arith.constant 0 : index
    %c0_47 = arith.constant 0 : index
    %145 = vector.load %arg5[%c0_45, %c0_46, %c0_47] : memref<1x32x64xbf16, #tpu.memory_space<vmem>>, vector<1x32x64xbf16>
    %146 = vector.shape_cast %145 : vector<1x32x64xbf16> to vector<32x64xbf16>
    %cst_48 = arith.constant dense<0.000000e+00> : vector<16x64xf32>
    %147 = tpu.matmul %144, %146, %cst_48 {dimension_numbers = #tpu.dot_dimension_numbers<[1], [0], [0], [1], [0, 0, 1, 1], [], []>} : vector<16x32xbf16>, vector<32x64xbf16>, vector<16x64xf32> -> vector<16x64xf32>
    %c0_49 = arith.constant 0 : index
    %c0_50 = arith.constant 0 : index
    %c0_51 = arith.constant 0 : index
    %148 = vector.load %arg8[%c0_49, %c0_50, %c0_51] : memref<1x1x64xf32, #tpu.memory_space<vmem>>, vector<1x1x64xf32>
    %149 = vector.shape_cast %148 : vector<1x1x64xf32> to vector<1x64xf32>
    %150 = vector.broadcast %149 : vector<1x64xf32> to vector<16x64xf32>
    %151 = arith.addf %147, %150 : vector<16x64xf32>
    %cst_52 = arith.constant 5.000000e-01 : f32
    %152 = vector.broadcast %cst_52 : f32 to vector<16x64xf32>
    %153 = arith.mulf %152, %151 : vector<16x64xf32>
    %cst_53 = arith.constant 0.707106769 : f32
    %154 = vector.broadcast %cst_53 : f32 to vector<16x64xf32>
    %155 = arith.mulf %151, %154 : vector<16x64xf32>
    %156 = math.erf %155 : vector<16x64xf32>
    %cst_54 = arith.constant 1.000000e+00 : f32
    %157 = vector.broadcast %cst_54 : f32 to vector<16x64xf32>
    %158 = arith.addf %157, %156 : vector<16x64xf32>
    %159 = arith.mulf %153, %158 : vector<16x64xf32>
    %160 = arith.truncf %159 : vector<16x64xf32> to vector<16x64xbf16>
    %c0_55 = arith.constant 0 : index
    %c0_56 = arith.constant 0 : index
    %c0_57 = arith.constant 0 : index
    %161 = vector.load %arg6[%c0_55, %c0_56, %c0_57] : memref<1x64x32xbf16, #tpu.memory_space<vmem>>, vector<1x64x32xbf16>
    %162 = vector.shape_cast %161 : vector<1x64x32xbf16> to vector<64x32xbf16>
    %cst_58 = arith.constant dense<0.000000e+00> : vector<16x32xf32>
    %163 = tpu.matmul %160, %162, %cst_58 {dimension_numbers = #tpu.dot_dimension_numbers<[1], [0], [0], [1], [0, 0, 1, 1], [], []>} : vector<16x64xbf16>, vector<64x32xbf16>, vector<16x32xf32> -> vector<16x32xf32>
    %164 = vector.broadcast %13 : vector<1x32xf32> to vector<16x32xf32>
    %165 = arith.addf %163, %164 : vector<16x32xf32>
    %166 = arith.addf %143, %165 : vector<16x32xf32>
    %cst_59 = arith.constant dense<0.000000e+00> : vector<16xf32>
    %167 = vector.multi_reduction <add>, %166, %cst_59 [1] : vector<16x32xf32> to vector<16xf32>
    %168 = vector.shape_cast %167 : vector<16xf32> to vector<16x1xf32>
    %cst_60 = arith.constant 3.200000e+01 : f32
    %169 = vector.broadcast %cst_60 : f32 to vector<16x1xf32>
    %170 = arith.divf %168, %169 : vector<16x1xf32>
    %171 = vector.broadcast %170 : vector<16x1xf32> to vector<16x32xf32>
    %172 = arith.subf %166, %171 : vector<16x32xf32>
    %173 = arith.mulf %172, %172 : vector<16x32xf32>
    %cst_61 = arith.constant dense<0.000000e+00> : vector<16xf32>
    %174 = vector.multi_reduction <add>, %173, %cst_61 [1] : vector<16x32xf32> to vector<16xf32>
    %175 = vector.shape_cast %174 : vector<16xf32> to vector<16x1xf32>
    %cst_62 = arith.constant 3.200000e+01 : f32
    %176 = vector.broadcast %cst_62 : f32 to vector<16x1xf32>
    %177 = arith.divf %175, %176 : vector<16x1xf32>
    %178 = vector.broadcast %170 : vector<16x1xf32> to vector<16x32xf32>
    %179 = arith.subf %166, %178 : vector<16x32xf32>
    %cst_63 = arith.constant 9.99999974E-6 : f32
    %180 = vector.broadcast %cst_63 : f32 to vector<16x1xf32>
    %181 = arith.addf %177, %180 : vector<16x1xf32>
    %182 = math.rsqrt %181 : vector<16x1xf32>
    %183 = vector.broadcast %182 : vector<16x1xf32> to vector<16x32xf32>
    %184 = arith.mulf %179, %183 : vector<16x32xf32>
    %185 = vector.broadcast %14 : vector<1x32xf32> to vector<16x32xf32>
    %186 = arith.mulf %184, %185 : vector<16x32xf32>
    %187 = vector.broadcast %15 : vector<1x32xf32> to vector<16x32xf32>
    %188 = arith.addf %186, %187 : vector<16x32xf32>
    %c0_64 = arith.constant 0 : index
    %c0_65 = arith.constant 0 : index
    %189 = vector.load %arg10[%c0_64, %c0_65] : memref<16x32xf32, #tpu.memory_space<vmem>>, vector<16x32xf32>
    tpu.vector_store %arg10[%c0_64, %c0_65], %188 {strides = array<i32>} : memref<16x32xf32, #tpu.memory_space<vmem>>, vector<16x32xf32>,
    %c1_i32 = arith.constant 1 : i32
    %190 = arith.cmpi eq, %arg1, %c1_i32 : i32
    %191 = arith.extui %190 : i1 to i32
    %c0_i32_66 = arith.constant 0 : i32
    %192 = arith.cmpi ne, %191, %c0_i32_66 : i32
    scf.if %192 {
      %193 = vector.shape_cast %188 : vector<16x32xf32> to vector<2x8x32xf32>
      %194 = arith.truncf %193 : vector<2x8x32xf32> to vector<2x8x32xbf16>
      %c0_67 = arith.constant 0 : index
      %c0_68 = arith.constant 0 : index
      %c0_69 = arith.constant 0 : index
      %195 = vector.load %arg9[%c0_67, %c0_68, %c0_69] : memref<2x8x32xbf16, #tpu.memory_space<vmem>>, vector<2x8x32xbf16>
      tpu.vector_store %arg9[%c0_67, %c0_68, %c0_69], %194 {strides = array<i32>} : memref<2x8x32xbf16, #tpu.memory_space<vmem>>, vector<2x8x32xbf16>,
    } else {
    }
    return
  }
  func.func @transform_0(%arg0: i32, %arg1: i32) -> (i32, i32, i32) {
    %c0_i32 = arith.constant 0 : i32
    %c0_i32_0 = arith.constant 0 : i32
    %c0_i32_1 = arith.constant 0 : i32
    return %arg0, %c0_i32, %c0_i32_0 : i32, i32, i32
  }
  func.func @transform_1(%arg0: i32, %arg1: i32) -> (i32, i32, i32, i32) {
    %c0_i32 = arith.constant 0 : i32
    %c0_i32_0 = arith.constant 0 : i32
    %c0_i32_1 = arith.constant 0 : i32
    %c0_i32_2 = arith.constant 0 : i32
    return %arg1, %c0_i32, %c0_i32_0, %c0_i32_1 : i32, i32, i32, i32
  }
  func.func @transform_2(%arg0: i32, %arg1: i32) -> (i32, i32, i32) {
    %c0_i32 = arith.constant 0 : i32
    %c0_i32_0 = arith.constant 0 : i32
    %c0_i32_1 = arith.constant 0 : i32
    return %arg1, %c0_i32, %c0_i32_0 : i32, i32, i32
  }
  func.func @transform_3(%arg0: i32, %arg1: i32) -> (i32, i32, i32) {
    %c0_i32 = arith.constant 0 : i32
    %c0_i32_0 = arith.constant 0 : i32
    %c0_i32_1 = arith.constant 0 : i32
    return %arg1, %c0_i32, %c0_i32_0 : i32, i32, i32
  }
  func.func @transform_4(%arg0: i32, %arg1: i32) -> (i32, i32, i32) {
    %c0_i32 = arith.constant 0 : i32
    %c0_i32_0 = arith.constant 0 : i32
    %c0_i32_1 = arith.constant 0 : i32
    return %arg1, %c0_i32, %c0_i32_0 : i32, i32, i32
  }
  func.func @transform_5(%arg0: i32, %arg1: i32) -> (i32, i32, i32) {
    %c0_i32 = arith.constant 0 : i32
    %c0_i32_0 = arith.constant 0 : i32
    %c0_i32_1 = arith.constant 0 : i32
    return %arg1, %c0_i32, %c0_i32_0 : i32, i32, i32
  }
  func.func @transform_6(%arg0: i32, %arg1: i32) -> (i32, i32, i32) {
    %c0_i32 = arith.constant 0 : i32
    %c0_i32_0 = arith.constant 0 : i32
    %c0_i32_1 = arith.constant 0 : i32
    return %arg1, %c0_i32, %c0_i32_0 : i32, i32, i32
  }
  func.func @transform_7(%arg0: i32, %arg1: i32) -> (i32, i32, i32) {
    %c0_i32 = arith.constant 0 : i32
    %c0_i32_0 = arith.constant 0 : i32
    %c0_i32_1 = arith.constant 0 : i32
    return %arg0, %c0_i32, %c0_i32_0 : i32, i32, i32
  }
}

</mosaic_0001>

<bundles_post_ra>
// kernel: tpu_custom_call.1
= control target key start
LH: loop header
LB: loop body
LE: loop exit
PB: predicated region body
PF: predicated region fallthrough
CT: control target
= control target key end

     0   :  { %s3136_s0 = inlined_call_operand.hbm [shape: f32[2,8,32], index: 0, kind: input, shape index: {}]   ;;  %s3137_s1 = inlined_call_operand.vmem [shape: bf16[2,3,32,32], index: 1, kind: input, shape index: {}]   ;;  %s3138_s2 = inlined_call_operand.vmem [shape: bf16[2,32,32], index: 2, kind: input, shape index: {}]   ;;  %s3139_s3 = inlined_call_operand.hbm [shape: bf16[2,32,64], index: 3, kind: input, shape index: {}]   ;;  %s3140_s4 = inlined_call_operand.vmem [shape: bf16[2,64,32], index: 4, kind: input, shape index: {}]   ;;  %s3141_s5 = inlined_call_operand.vmem [shape: f32[2,9,32], index: 5, kind: input, shape index: {}]   ;;  %s3142_s6 = inlined_call_operand.vmem [shape: f32[2,1,64], index: 6, kind: input, shape index: {}]   ;;  %s3143_s7 = inlined_call_operand.hbm [shape: bf16[2,8,32], index: 7, kind: output, shape index: {}]  }
   0x1   :  { %3149 = sst [smem:[#allocation13_spill]] %s3136_s0 }
   0x2   :  { %3150 = sst [smem:[#allocation14_spill]] %s3139_s3 }
   0x3   :  { %12 = vsyncpa [#allocation5], 0 }
   0x4   :  { %13 = vsyncpa [#allocation8], 0 }
   0x5   :  { %15 = vsyncpa [#allocation8 + $0x1], 0 }
   0x6   :  { %16 = vsyncpa [#allocation6], 0  ;;  %s2648_s24 = smov 0   ;;  %s2650_s25 = smov 0  }
   0x7   :  { %s2652_s26 = smov 0   ;;  %s2654_s27 = smov 0  }
   0x8   :  { %s2656_s28 = smov 0   ;;  %s2658_s29 = smov 0  }
   0x9 LB: > { %s3148_s30 = sadd.s32 4294967295, %s2588_s29   ;;  %p132_p0 = scmp.ne.s32.totalorder %s2572_s25, %s2568_s24  ;;  %s2588_s29 = sphi %s2658_s29, %s22_s29   ;;  %s2584_s28 = sphi %s2656_s28, %s3169_s28   ;;  %s2580_s27 = sphi %s2654_s27, %s3168_s27   ;;  %s2576_s26 = sphi %s2652_s26, %s3167_s26   ;;  %s2572_s25 = sphi %s2650_s25, %s3166_s25   ;;  %s2568_s24 = sphi %s2648_s24, %s3165_s24  }
   0xa   : > { %p2680_p1 = scmp.eq.s32.totalorder %s3148_s30, 0  ;;  %p2012_p2 = scmp.ge.s32.totalorder %s2588_s29, 1 }
   0xb   : > { %p247_p3 = scmp.lt.s32.totalorder %s2588_s29, 3  ;;  %s2590_s11 = smov [#allocation4]  }
   0xc   : > { %s3151_s8 = scalar_select %p2680_p1, 1, 0 }
   0xd   : > { %p2688_p4 = por %p2680_p1, %p132_p0  ;;  %p2692_p5 = pnand %p2012_p2, %p247_p3 }
   0xe   : > { %s262_s12 = sshll.u32 %s2590_s11, 4  ;;  %s31_s14 = sadd.s32 1, %s2584_s28  ;;  %s263_s12 = int_to_ptr.vmem [resolvable:$true] %s262_s12 }
   0xf   : > { %s3152_s9 = scalar_select %p2688_p4, 1, 0 }
  0x10   : > { %s3153_s10 = scalar_select %p2692_p5, 1, 0 }
  0x11   : > { %p2295_p6 = pneg %p2692_p5  ;;  %s3155_s0 = sld [smem:[#allocation13_spill]] }
  0x13   : > { %p2700_p7 = pnand %p2295_p6, %p2680_p1 }
  0x15   : > { %p2448_p9 = pneg %p2700_p7 }
  0x17   : > { %s2446_s17 = scalar_lea.hbm %s3155_s0, 256 }
  0x18   : > { %p2447_p8 = scmp.ne.s32.totalorder %s3155_s0, %s2446_s17  ;;  %p2453_p12 = scmp.lt.u32.totalorder %s2446_s17, %s3155_s0 }
  0x1a   : > { %p2449_p10 = pnand %p2448_p9, %p2447_p8 }
  0x1c   : > { %p2450_p11 = pneg %p2449_p10 }
  0x1e   : > { %p2455_p13 = pnand %p2453_p12, %p2450_p11 }
  0x20   : > { %2458 = shalt.err (!%p2455_p13)
}
  0x21   : > { %s2459_s22 = scalar_lea.vmem %s263_s12, 256  ;;  %p2467_p6 = scmp.lt.s32.totalorder %s263_s12, %s263_s12 }
  0x22   : > { %p2460_p0 = scmp.ne.s32.totalorder %s263_s12, %s2459_s22  ;;  %p2468_p4 = scmp.lt.s32.totalorder %s2459_s22, %s2459_s22 }
  0x24   : > { %p2462_p2 = pnand %p2460_p0, %p2448_p9  ;;  %p2469_p1 = por %p2468_p4, %p2467_p6 }
  0x26   : > { %p2463_p3 = pneg %p2462_p2 }
  0x28   : > { %p2470_p5 = pnand %p2469_p1, %p2463_p3 }
  0x2a   : > { %2473 = shalt.err (!%p2470_p5)
}
  0x2b   : > { %s2591_s23 = smov 128   ;;  %s2592_s24 = smov 8  }
  0x2c   : > { %2298 = dma.hbm_to_vmem [thread:$0]  (!%p2700_p7), %s3155_s0, 256, %s263_s12, [#allocation5], %s2591_s23, %s2591_s23, %s2592_s24  }
  0x2d   : > { %p32_p4 = scmp.ge.s32.totalorder %s31_s14, 2  ;;  %s119_s16 = sadd.s32 1, %s2576_s26 }
  0x2e   : > { %p126_p1 = scmp.ne.s32.totalorder %s2576_s26, %s2572_s25  ;;  %p127_p5 = scmp.eq.s32.totalorder %s2588_s29, 0 }
  0x2f   : > { %s3171_s14 = smov (%p32_p4, %s31_s14), 0  ;;  %p2304_p9 = scmp.lt.s32.totalorder %s2588_s29, 2 }
  0x30   : > { %p128_p8 = por %p127_p5, %p126_p1  ;;  %s116_s17 = ssub.s32 %s2584_s28, %s3171_s14 }
  0x31   : > { %s292_s18 = sand.u32 1, %s2576_s26   ;;  %p117_p10 = scmp.eq.s32.totalorder %s116_s17, 0 }
  0x32   : > { %s2015_s19 = sshll.u32 %s292_s18, 4  ;;  %s2080_s20 = sshll.u32 %s2584_s28, 8 }
  0x33   : > { %s2733_s21 = scalar_select %p117_p10, %s2576_s26, %s119_s16  }
  0x34   : > { %s3156_s3 = sld [smem:[#allocation14_spill]]  ;;  %s296_s23 = scalar_lea.vmem [#allocation7], %s2015_s19 }
  0x35   : > { %s303_s24 = sshll.u32 %s296_s23, 4  ;;  %p2740_p7 = pnand %p2304_p9, %p128_p8  ;;  %s2744_s24 = int_to_ptr.vmem [resolvable:$true] %s303_s24 }
  0x36   : > { %s2746_s15 = scalar_lea.sflag [#allocation8], %s292_s18 }
  0x37   : > { %p2476_p12 = pneg %p2740_p7 }
  0x3a   : > { %s2738_s12 = scalar_lea.hbm %s3156_s3, %s2080_s20  ;;  %s2479_s20 = scalar_lea.hbm %s3156_s3, 512 }
  0x3b   : > { %s2474_s16 = scalar_lea.hbm %s2738_s12, 256  ;;  %p2480_p2 = scmp.lt.u32.totalorder %s2738_s12, %s3156_s3 }
  0x3c   : > { %p2475_p11 = scmp.ne.s32.totalorder %s2738_s12, %s2474_s16  ;;  %p2481_p3 = scmp.lt.u32.totalorder %s2479_s20, %s2474_s16 }
  0x3d   : > { %p2483_p4 = scmp.lt.u32.totalorder %s2474_s16, %s2738_s12 }
  0x3e   : > { %p2477_p13 = pnand %p2476_p12, %p2475_p11  ;;  %p2482_p6 = por %p2481_p3, %p2480_p2 }
  0x40   : > { %p2478_p0 = pneg %p2477_p13  ;;  %p2484_p1 = por %p2483_p4, %p2482_p6 }
  0x42   : > { %p2485_p5 = pnand %p2484_p1, %p2478_p0 }
  0x44   : > { %2488 = shalt.err (!%p2485_p5)
}
  0x45   : > { %s2489_s18 = scalar_lea.vmem %s2744_s24, 256  ;;  %s2593_s23 = smov [#allocation7]  }
  0x46   : > { %p2490_p8 = scmp.ne.s32.totalorder %s2744_s24, %s2489_s18  ;;  %s2494_s17 = sshll.u32 %s2593_s23, 4  ;;  %s2495_s17 = int_to_ptr.vmem [resolvable:$false] %s2494_s17 }
  0x47   : > { %s2496_s19 = scalar_lea.vmem %s2495_s17, 512  ;;  %p2497_p11 = scmp.lt.s32.totalorder %s2744_s24, %s2495_s17 }
  0x48   : > { %p2492_p9 = pnand %p2490_p8, %p2476_p12  ;;  %p2498_p13 = scmp.lt.s32.totalorder %s2496_s19, %s2489_s18 }
  0x4a   : > { %p2493_p10 = pneg %p2492_p9  ;;  %p2499_p2 = por %p2498_p13, %p2497_p11 }
  0x4c   : > { %p2500_p3 = pnand %p2499_p2, %p2493_p10 }
  0x4e   : > { %2503 = shalt.err (!%p2500_p3)
}
  0x4f   : > { %s2594_s16 = smov 64   ;;  %s2595_s20 = smov 4  }
  0x50   : > { %2302 = dma.hbm_to_vmem [thread:$0]  (!%p2740_p7), %s2738_s12, 256, %s2744_s24, %s2746_s15, %s2594_s16, %s2594_s16, %s2595_s20  }
  0x51   : > { %p3158_p12 = scmp.ne.s32.totalorder %s3153_s10, 0 }
  0x52   : > { %p3159_p0 = scmp.ne.s32.totalorder (!%p3158_p12), %s3151_s8, 0 }
  0x53   : > { %337 = sbr.rel (%p3158_p12) target bundleno = 4153 (0x1039), region = 48 }
  0x5a   : > { %2555 = dma.done.wait (%p3159_p0), [#allocation5], 256  }
  0x5b   : > { %2557 = vsyncadd (%p3159_p0), [#allocation5], 4294967040  ;;  %s343_s13 = sand.u32 1, %s2572_s25   ;;  %p3160_p6 = scmp.ne.s32.totalorder %s3152_s9, 0 }
  0x5c   : > { %s2781_s22 = sshll.u32 %s343_s13, 4  ;;  %s344_s18 = scalar_lea.sflag [#allocation8], %s343_s13 }
  0x5d   : > { %2559 = dma.done.wait (%p3160_p6), %s344_s18, 256  }
  0x5e   : > { %2561 = vsyncadd (%p3160_p6), %s344_s18, 4294967040  ;;  %p397_p7 = scmp.lt.s32.totalorder %s2580_s27, 1  ;;  %p2028_p4 = scmp.ne.s32.totalorder %s2580_s27, 0 }
  0x5f   : > { %v426_v0 = vld [vmem:[#allocation4] sm:$0xff] (!%p2028_p4)  ;;  %vm428_vm0 = vcmask (!%p2028_p4), 261120   ;;  %v427_v1 = vld [vmem:[#allocation4 + $0x8] sm:$0xff] (!%p2028_p4)  ;;  %v431_v2 = vlaneseq (!%p2028_p4)  ;;  %vm437_vm1 = vcmask (!%p2028_p4), 64512   ;;  %v2596_v5 = vmov (!%p2028_p4), 0.0  }
  0x60   : > { %s2790_s10 = scalar_select %p397_p7, %s2580_s27, 1 }
  0x61   : > { %425 = sbr.rel (%p2028_p4) target bundleno = 104 (0x68), region = 60  ;;  %429 = vst.msk [vmem:[#allocation2] sm:$0xff] (!%p2028_p4), %vm428_vm0, %v426_v0  ;;  %430 = vst.msk [vmem:[#allocation2 + $0x8] sm:$0xff] (!%p2028_p4), %vm428_vm0, %v427_v1  ;;  %v432_v3 = vshrl.u32 (!%p2028_p4), %v431_v2, 7  ;;  %v434_v4 = vand.u32 (!%p2028_p4), 127, %v431_v2 }
  0x62   : > { %s2284_s8 = smul.u32 48, %s2790_s10  ;;  %s2081_s12 = sshll.u32 %s2790_s10, 4 }
  0x63   : > { %s2797_s15 = scalar_lea.vmem %s3138_s2, %s2081_s12  ;;  %s2082_s17 = sshll.u32 %s2790_s10, 5  ;;  %vm435_vm2 = vcmp.gt.s32.totalorder (!%p2028_p4), %v434_v4, %v432_v3 }
  0x64   : > { %s2803_s16 = scalar_lea.vmem %s3137_s1, %s2284_s8  ;;  %s2808_s18 = scalar_lea.vmem %s3140_s4, %s2082_s17  ;;  %v436_v6 = vsel (!%p2028_p4), %vm435_vm2, -1e+30, %v2596_v5 }
  0x65   : > { %s2813_s0 = scalar_lea.vmem %s3141_s5, %s2081_s12  ;;  %s419_s11 = scalar_lea.vmem %s3142_s6, %s2790_s10  ;;  %438 = vst.msk [vmem:[#allocation3] sm:$0xff] (!%p2028_p4), %vm437_vm1, %v436_v6 }
  0x68 PF: > { %v2388_v7 = vld [vmem:[%s2803_s16 + $0x10] sm:$0xff]   ;;  %v2597_v8 = vmov 0.0   ;;  %v2389_v9 = vld [vmem:[%s2803_s16] sm:$0xff]   ;;  %v2390_v10 = vld [vmem:[%s2803_s16 + $0x18] sm:$0xff]   ;;  %vm2598_vm3 = vmmov 0   ;;  %vm464_vm4 = vcmask 261120   ;;  %v448_v17 = vlaneseq }
  0x69   : > { %2144 = vmatprep.subr.bf16.mxu1 %v2597_v8  ;;  %2136 = vmatprep.subr.bf16.mxu0 %v2597_v8  ;;  %v2391_v11 = vld [vmem:[%s2803_s16 + $0x8] sm:$0xff]   ;;  %v2830_v12 = vld [vmem:[#allocation2] sm:$0xff]  ;;  %vm642_vm5 = vcmask 64512   ;;  %s2599_s3 = smov 120   ;;  %vm762_vm6 = vcmask 1043456   ;;  %s2600_s30 = smov 112  }
  0x6a   : > { %2145 = vmatpush3.bf16.msra.mxu1 %v2388_v7  ;;  %2148 = vmatprep.mubr.msk.bf16.mxu1 %vm2598_vm3, %v2597_v8  ;;  %v2832_v13 = vld [vmem:[#allocation2 + $0x8] sm:$0xff]  ;;  %v2392_v15 = vld [vmem:[%s2803_s16 + $0x20] sm:$0xff]   ;;  %v2853_v18 = vshrl.u32 %v448_v17, 7  ;;  %s2601_s23 = smov 104   ;;  %s2602_s8 = smov 8   ;;  %vm1544_vm7 = vcmask 130048  }
  0x6b   : > { %2137 = vmatpush3.bf16.msra.mxu0 %v2389_v9  ;;  %2146 = vmatprep.subr.bf16.mxu1 %v2597_v8  ;;  %v441_v14 = vpack.c.bf16 %v2832_v13, %v2830_v12  ;;  %v2393_v16 = vld [vmem:[%s2803_s16 + $0x28] sm:$0xff]   ;;  %v2857_v20 = vld [vmem:[%s2813_s0] sm:$0xff]  ;;  %s2603_s12 = smov 16   ;;  %s2604_s17 = smov 24   ;;  %vm1547_vm8 = vcmask 195584   ;;  %vm1771_vm9 = vcmask 523264  }
  0x6c   : > { %2138 = vmatprep.subr.bf16.mxu0 %v2597_v8  ;;  %2140 = vmatprep.mubr.msk.bf16.mxu0 %vm2598_vm3, %v2597_v8  ;;  %v518_v19 = vsub.s32 1, %v2853_v18  ;;  %v450_v21 = vsub.s32 0, %v2853_v18  ;;  %v580_v48 = vsub.s32 2, %v2853_v18  ;;  %v2898_v56 = vld [vmem:[#allocation3] sm:$0xff]  ;;  %p2075_p1 = scmp.ne.s32.totalorder %s2580_s27, 1 }
  0x6d   : > { %vm1864_vm10 = vcmask (!%p2075_p1), 257024  }
  0x6e   : > { %2147 = vmatpush3.bf16.msra.mxu1 %v2390_v10  ;;  %v519_v22 = vrot.slane %v2857_v20, %v518_v19  ;;  %v451_v23 = vrot.slane %v2857_v20, %v450_v21  ;;  %v581_v49 = vrot.slane %v2857_v20, %v580_v48 }
  0x6f   : > { %2139 = vmatpush3.bf16.msra.mxu0 %v2391_v11  ;;  %2160 = vmatprep.subr.bf16.mxu1 %v2597_v8 }
  0x70   : > { %2152 = vmatprep.subr.bf16.mxu0 %v2597_v8 }
  0x71   : > { %2149 = vmatmul.mubr.msk.bf16.vlgmr.msra.gmra.mrb[0].mxu1 %vm464_vm4, %v441_v14 }
  0x72   : > { %2141 = vmatmul.mubr.msk.bf16.vlgmr.msra.gmra.mrb[0].mxu0 %vm464_vm4, %v441_v14  ;;  %2162 = vmatprep.mubr.msk.bf16.mxu1 %vm2598_vm3, %v2597_v8 }
  0x73   : > { %2153 = vmatpush3.bf16.msra.mxu0 %v2392_v15  ;;  %2156 = vmatprep.mubr.msk.bf16.mxu0 %vm2598_vm3, %v2597_v8 }
  0x74   : > { %2154 = vmatprep.subr.bf16.mxu0 %v2597_v8 }
  0x77   : > { %2155 = vmatpush3.bf16.msra.mxu0 %v2393_v16 }
  0x78   : > { %2166 = vmatprep.subr.bf16.mxu0 %v2597_v8 }
  0x7a   : > { %2157 = vmatmul.mubr.msk.bf16.vlgmr.msra.gmra.mrb[4].mxu0 %vm464_vm4, %v441_v14 }
  0x7b   : > { %2168 = vmatprep.mubr.msk.bf16.mxu0 %vm2598_vm3, %v2597_v8 }
 0x144   : > { %v566_v24 = vpop.f32.mrb[0].mxu1 }
 0x145   : > { %v567_v25 = vadd.f32 %v566_v24, %v519_v22  ;;  %v2150_v26 = vpop.f32.mrb[1].mxu1  ;;  %v502_v27 = vpop.f32.mrb[0].mxu0 }
 0x146   : > { %v569_v28 = vpop.f32.mrb[2].mxu1  ;;  %v503_v29 = vadd.f32 %v502_v27, %v451_v23  ;;  %v2142_v30 = vpop.f32.mrb[1].mxu0 }
 0x147   : > { %v2862_v31 = vpack.c.bf16 %v567_v25, %v567_v25  ;;  %v570_v32 = vadd.f32 %v569_v28, %v519_v22  ;;  %v2151_v33 = vpop.f32.mrb[3].mxu1  ;;  %v505_v34 = vpop.f32.mrb[2].mxu0 }
 0x148   : > { %v2143_v35 = vpop.f32.mrb[3].mxu0  ;;  %v509_v37 = vmul.f32 0.35355338, %v503_v29  ;;  %v506_v38 = vadd.f32 %v505_v34, %v451_v23 }
 0x149   : > { %v2864_v36 = vpack.c.bf16 %v570_v32, %v570_v32  ;;  %v647_v39 = vsel %vm642_vm5, %v2862_v31, 0 }
 0x14a   : > { %2161 = vmatpush3.bf16.xpose.msra.mxu1 %v647_v39  ;;  %v2873_v41 = vpack.c.bf16 %v509_v37, %v509_v37  ;;  %v510_v42 = vmul.f32 0.35355338, %v506_v38 }
 0x14b   : > { %908 = vrot.lane.b32.xlu1 %v2864_v36, %s2599_s3  ;;  %v693_v40 = vsel %vm642_vm5, %v2864_v36, 0  ;;  %2172 = vmatprep.subr.bf16.mxu1 %v2597_v8 }
 0x14c   : > { %2167 = vmatpush3.bf16.xpose.msra.mxu0 %v693_v40  ;;  %v2876_v47 = vpack.c.bf16 %v510_v42, %v510_v42 }
 0x14d   : > { %v628_v43 = vpop.f32.mrb[4].mxu0  ;;  %2178 = vmatprep.subr.bf16.mxu0 %v2597_v8 }
 0x14e   : > { %v2158_v44 = vpop.f32.mrb[5].mxu0  ;;  %v629_v50 = vadd.f32 %v628_v43, %v581_v49 }
 0x14f   : > { %v631_v45 = vpop.f32.mrb[6].mxu0 }
 0x150   : > { %v2159_v46 = vpop.f32.mrb[7].mxu0  ;;  %v632_v51 = vadd.f32 %v631_v45, %v581_v49  ;;  %v2888_v52 = vpack.c.bf16 %v629_v50, %v629_v50 }
 0x151   : > { %2163 = vmatmul.mubr.msk.bf16.vlgmr.msra.gmra.mrb[4].mxu1 %vm642_vm5, %v2873_v41 }
 0x152   : > { %2174 = vmatprep.mubr.msk.bf16.mxu1 %vm2598_vm3, %v2597_v8  ;;  %v2890_v53 = vpack.c.bf16 %v632_v51, %v632_v51  ;;  %v764_v54 = vsel %vm762_vm6, %v2888_v52, 0 }
 0x153   : > { %2169 = vmatmul.mubr.msk.bf16.vlgmr.msra.gmra.mrb[8].mxu0 %vm642_vm5, %v2876_v47  ;;  %2173 = vmatpush3.bf16.msra.mxu1 %v764_v54 }
 0x154   : > { %2180 = vmatprep.mubr.msk.bf16.mxu0 %vm2598_vm3, %v2597_v8  ;;  %v810_v55 = vsel %vm762_vm6, %v2890_v53, 0  ;;  %2184 = vmatprep.subr.bf16.mxu1 %v2597_v8 }
 0x155   : > { %2179 = vmatpush3.bf16.msra.mxu0 %v810_v55 }
 0x156   : > { %2190 = vmatprep.subr.bf16.mxu0 %v2597_v8 }
 0x1bd   : > { %v909_v19 = vpop.permute.xlu1 %908 }
 0x1be   : > { %v914_v32 = vsel %vm642_vm5, %v909_v19, 0 }
 0x224   : > { %v683_v57 = vpop.f32.mrb[4].mxu1 }
 0x225   : > { %v684_v58 = vadd.f32 %v683_v57, %v2898_v56  ;;  %v2164_v59 = vpop.f32.mrb[5].mxu1 }
 0x226   : > { %v686_v60 = vpop.f32.mrb[6].mxu1  ;;  %v729_v61 = vpop.f32.mrb[8].mxu0 }
 0x227   : > { %v730_v62 = vadd.f32 %v729_v61, %v2898_v56  ;;  %v2165_v63 = vpop.f32.mrb[7].mxu1  ;;  %v2170_v0 = vpop.f32.mrb[9].mxu0  ;;  %v735_v1 = vsel %vm642_vm5, %v684_v58, -inf }
 0x228   : > { %736 = vmax.xlane.f32.xlu0 %v735_v1  ;;  %v732_v2 = vpop.f32.mrb[10].mxu0 }
 0x229   : > { %v2171_v3 = vpop.f32.mrb[11].mxu0  ;;  %v738_v4 = vsel %vm642_vm5, %v730_v62, -inf }
 0x22c   : > { %739 = vmax.xlane.f32.xlu0 %v738_v4 }
 0x242   : > { %856 = vrot.lane.b32.xlu0 %v2862_v31, %s2599_s3 }
 0x2b5   : > { %v737_v5 = vpop.xlane.xlu0 %736 }
 0x2b6   : > { %v741_v6 = vsub.f32 %v684_v58, %v737_v5 }
 0x2b8   : > { %v743_v7 = vmul.f32 1.442695, %v741_v6 }
 0x2b9   : > { %v740_v9 = vpop.xlane.xlu0 %739 }
 0x2ba   : > { %2402 = vpow2.f32 %v743_v7  ;;  %v742_v10 = vsub.f32 %v730_v62, %v740_v9 }
 0x2bc   : > { %v745_v11 = vmul.f32 1.442695, %v742_v10 }
 0x2bd   : > { %v857_v25 = vpop.permute.xlu0 %856 }
 0x2be   : > { %2404 = vpow2.f32 %v745_v11  ;;  %v862_v28 = vsel %vm642_vm5, %v857_v25, 0 }
 0x2c4   : > { %v2403_v14 = vpop.eup %2402 }
 0x2c5   : > { %v747_v15 = vsel %vm642_vm5, %v2403_v14, 0.0 }
 0x2c6   : > { %748 = vadd.xlane.f32.xlu1 %v747_v15 }
 0x2c8   : > { %v2405_v16 = vpop.eup %2404 }
 0x2c9   : > { %v750_v17 = vsel %vm642_vm5, %v2405_v16, 0.0 }
 0x2ca   : > { %751 = vadd.xlane.f32.xlu1 %v750_v17 }
 0x2db   : > { %853 = vrot.lane.b32.xlu1 %v2873_v41, %s2599_s3 }
 0x2df   : > { %905 = vrot.lane.b32.xlu1 %v2876_v47, %s2599_s3 }
 0x353   : > { %v749_v21 = vpop.xlane.xlu1 %748 }
 0x354   : > { %2406 = vrcp.f32 %v749_v21 }
 0x357   : > { %v752_v22 = vpop.xlane.xlu1 %751 }
 0x358   : > { %2408 = vrcp.f32 %v752_v22 }
 0x35b   : > { %v854_v33 = vpop.permute.xlu1 %853 }
 0x35e   : > { %v2407_v23 = vpop.eup %2406 }
 0x35f   : > { %v755_v24 = vmul.f32 %v2407_v23, %v2403_v14  ;;  %v906_v34 = vpop.permute.xlu1 %905 }
 0x361   : > { %v757_v26 = vpack.c.bf16 %v755_v24, %v755_v24 }
 0x362   : > { %v2409_v27 = vpop.eup %2408 }
 0x363   : > { %v756_v29 = vmul.f32 %v2409_v27, %v2405_v16  ;;  %2175 = vmatmul.mubr.msk.bf16.vlgmr.msra.gmra.mrb[8].mxu1 %vm642_vm5, %v757_v26 }
 0x364   : > { %2185 = vmatpush3.bf16.xpose.msra.mxu1 %v862_v28  ;;  %2186 = vmatprep.mubr.msk.bf16.mxu1 %vm2598_vm3, %v2597_v8 }
 0x365   : > { %v758_v30 = vpack.c.bf16 %v756_v29, %v756_v29  ;;  %2196 = vmatprep.subr.bf16.mxu1 %v2597_v8 }
 0x367   : > { %2181 = vmatmul.mubr.msk.bf16.vlgmr.msra.gmra.mrb[12].mxu0 %vm642_vm5, %v758_v30 }
 0x368   : > { %2191 = vmatpush3.bf16.xpose.msra.mxu0 %v914_v32  ;;  %2192 = vmatprep.mubr.msk.bf16.mxu0 %vm2598_vm3, %v2597_v8 }
 0x369   : > { %2202 = vmatprep.subr.bf16.mxu0 %v2597_v8 }
 0x36b   : > { %2187 = vmatmul.mubr.msk.bf16.vlgmr.msra.gmra.mrb[12].mxu1 %vm642_vm5, %v854_v33 }
 0x36c   : > { %2198 = vmatprep.mubr.msk.bf16.mxu1 %vm2598_vm3, %v2597_v8 }
 0x36f   : > { %2193 = vmatmul.mubr.msk.bf16.vlgmr.msra.gmra.mrb[16].mxu0 %vm642_vm5, %v906_v34 }
 0x370   : > { %2204 = vmatprep.mubr.msk.bf16.mxu0 %vm2598_vm3, %v2597_v8 }
 0x436   : > { %v2928_v35 = vpop.f32.mrb[8].mxu1 }
 0x437   : > { %v2176_v37 = vpop.f32.mrb[9].mxu1 }
 0x438   : > { %v803_v38 = vpop.f32.mrb[10].mxu1 }
 0x439   : > { %v2177_v39 = vpop.f32.mrb[11].mxu1 }
 0x43a   : > { %v2930_v40 = vpop.f32.mrb[12].mxu0 }
 0x43b   : > { %v2182_v42 = vpop.f32.mrb[13].mxu0 }
 0x43c   : > { %v849_v43 = vpop.f32.mrb[14].mxu0 }
 0x43d   : > { %v2183_v44 = vpop.f32.mrb[15].mxu0 }
 0x43e   : > { %v898_v45 = vpop.f32.mrb[12].mxu1 }
 0x43f   : > { %v899_v46 = vadd.f32 %v898_v45, %v2898_v56  ;;  %v2188_v48 = vpop.f32.mrb[13].mxu1 }
 0x440   : > { %v901_v49 = vpop.f32.mrb[14].mxu1 }
 0x441   : > { %v2189_v50 = vpop.f32.mrb[15].mxu1  ;;  %v956_v51 = vsel %vm642_vm5, %v899_v46, -inf }
 0x442   : > { %957 = vmax.xlane.f32.xlu0 %v956_v51  ;;  %v950_v54 = vpop.f32.mrb[16].mxu0 }
 0x443   : > { %v951_v55 = vadd.f32 %v950_v54, %v2898_v56  ;;  %v2194_v57 = vpop.f32.mrb[17].mxu0 }
 0x444   : > { %v953_v58 = vpop.f32.mrb[18].mxu0 }
 0x445   : > { %v2195_v59 = vpop.f32.mrb[19].mxu0  ;;  %v959_v60 = vsel %vm642_vm5, %v951_v55, -inf }
 0x446   : > { %960 = vmax.xlane.f32.xlu1 %v959_v60 }
 0x457   : > { %1030 = vrot.lane.b32.xlu1 %v2890_v53, %s2599_s3 }
 0x45b   : > { %1080 = vrot.lane.b32.xlu1 %v2862_v31, %s2600_s30 }
 0x45f   : > { %1130 = vrot.lane.b32.xlu1 %v2864_v36, %s2600_s30 }
 0x463   : > { %1128 = vrot.lane.b32.xlu1 %v2876_v47, %s2600_s30 }
 0x4cf   : > { %v958_v61 = vpop.xlane.xlu0 %957 }
 0x4d0   : > { %v962_v62 = vsub.f32 %v899_v46, %v958_v61 }
 0x4d2   : > { %v964_v63 = vmul.f32 1.442695, %v962_v62 }
 0x4d3   : > { %v961_v0 = vpop.xlane.xlu1 %960 }
 0x4d4   : > { %2410 = vpow2.f32 %v964_v63  ;;  %v963_v1 = vsub.f32 %v951_v55, %v961_v0 }
 0x4d6   : > { %v966_v2 = vmul.f32 1.442695, %v963_v1 }
 0x4d7   : > { %v1031_v3 = vpop.permute.xlu1 %1030 }
 0x4d8   : > { %2412 = vpow2.f32 %v966_v2  ;;  %v1036_v4 = vsel %vm762_vm6, %v1031_v3, 0 }
 0x4d9   : > { %2203 = vmatpush3.bf16.msra.mxu0 %v1036_v4 }
 0x4da   : > { %2214 = vmatprep.subr.bf16.mxu0 %v2597_v8 }
 0x4db   : > { %v1081_v17 = vpop.permute.xlu1 %1080 }
 0x4dc   : > { %v1086_v25 = vsel %vm642_vm5, %v1081_v17, 0 }
 0x4de   : > { %v2411_v5 = vpop.eup %2410 }
 0x4df   : > { %v968_v6 = vsel %vm642_vm5, %v2411_v5, 0.0  ;;  %v1131_v24 = vpop.permute.xlu1 %1130 }
 0x4e0   : > { %969 = vadd.xlane.f32.xlu0 %v968_v6  ;;  %v1136_v27 = vsel %vm642_vm5, %v1131_v24, 0 }
 0x4e2   : > { %v2413_v7 = vpop.eup %2412 }
 0x4e3   : > { %v971_v9 = vsel %vm642_vm5, %v2413_v7, 0.0  ;;  %v1129_v29 = vpop.permute.xlu1 %1128 }
 0x4e4   : > { %972 = vadd.xlane.f32.xlu0 %v971_v9 }
 0x4fa   : > { %981 = vrot.lane.b32.xlu0 %v2888_v52, %s2599_s3 }
 0x4fe   : > { %1078 = vrot.lane.b32.xlu0 %v2873_v41, %s2600_s30 }
 0x56d   : > { %v970_v10 = vpop.xlane.xlu0 %969 }
 0x56e   : > { %2414 = vrcp.f32 %v970_v10 }
 0x571   : > { %v973_v11 = vpop.xlane.xlu0 %972 }
 0x572   : > { %2416 = vrcp.f32 %v973_v11 }
 0x575   : > { %v982_v14 = vpop.permute.xlu0 %981 }
 0x576   : > { %v987_v15 = vsel %vm762_vm6, %v982_v14, 0 }
 0x577   : > { %2197 = vmatpush3.bf16.msra.mxu1 %v987_v15 }
 0x578   : > { %v2415_v16 = vpop.eup %2414  ;;  %2208 = vmatprep.subr.bf16.mxu1 %v2597_v8 }
 0x579   : > { %v976_v19 = vmul.f32 %v2415_v16, %v2411_v5  ;;  %v1079_v28 = vpop.permute.xlu0 %1078 }
 0x57b   : > { %v978_v21 = vpack.c.bf16 %v976_v19, %v976_v19 }
 0x57c   : > { %v2417_v22 = vpop.eup %2416 }
 0x57d   : > { %v977_v23 = vmul.f32 %v2417_v22, %v2413_v7  ;;  %2199 = vmatmul.mubr.msk.bf16.vlgmr.msra.gmra.mrb[16].mxu1 %vm642_vm5, %v978_v21 }
 0x57e   : > { %2210 = vmatprep.mubr.msk.bf16.mxu1 %vm2598_vm3, %v2597_v8 }
 0x57f   : > { %v979_v26 = vpack.c.bf16 %v977_v23, %v977_v23 }
 0x580   : > { %2209 = vmatpush3.bf16.xpose.msra.mxu1 %v1086_v25 }
 0x581   : > { %2205 = vmatmul.mubr.msk.bf16.vlgmr.msra.gmra.mrb[20].mxu0 %vm642_vm5, %v979_v26  ;;  %2220 = vmatprep.subr.bf16.mxu1 %v2597_v8 }
 0x582   : > { %2215 = vmatpush3.bf16.xpose.msra.mxu0 %v1136_v27  ;;  %2216 = vmatprep.mubr.msk.bf16.mxu0 %vm2598_vm3, %v2597_v8 }
 0x583   : > { %2226 = vmatprep.subr.bf16.mxu0 %v2597_v8 }
 0x587   : > { %2211 = vmatmul.mubr.msk.bf16.vlgmr.msra.gmra.mrb[20].mxu1 %vm642_vm5, %v1079_v28 }
 0x588   : > { %2222 = vmatprep.mubr.msk.bf16.mxu1 %vm2598_vm3, %v2597_v8 }
 0x589   : > { %2217 = vmatmul.mubr.msk.bf16.vlgmr.msra.gmra.mrb[24].mxu0 %vm642_vm5, %v1129_v29 }
 0x58a   : > { %2228 = vmatprep.mubr.msk.bf16.mxu0 %vm2598_vm3, %v2597_v8 }
 0x650   : > { %v2970_v30 = vpop.f32.mrb[16].mxu1 }
 0x651   : > { %v2200_v32 = vpop.f32.mrb[17].mxu1 }
 0x652   : > { %v1026_v33 = vpop.f32.mrb[18].mxu1 }
 0x653   : > { %v2201_v34 = vpop.f32.mrb[19].mxu1 }
 0x654   : > { %v2972_v37 = vpop.f32.mrb[20].mxu0 }
 0x655   : > { %v2373_v38 = vpack.i.bf16 %v2972_v37, %v2970_v30  ;;  %v2206_v39 = vpop.f32.mrb[21].mxu0 }
 0x656   : > { %v1075_v42 = vpop.f32.mrb[22].mxu0 }
 0x657   : > { %v2207_v43 = vpop.f32.mrb[23].mxu0 }
 0x65a   : > { %v1122_v44 = vpop.f32.mrb[20].mxu1 }
 0x65b   : > { %v1123_v45 = vadd.f32 %v1122_v44, %v2898_v56  ;;  %v2212_v46 = vpop.f32.mrb[21].mxu1 }
 0x65c   : > { %v1125_v48 = vpop.f32.mrb[22].mxu1  ;;  %v1172_v49 = vpop.f32.mrb[24].mxu0 }
 0x65d   : > { %v1173_v50 = vadd.f32 %v1172_v49, %v2898_v56  ;;  %v2213_v51 = vpop.f32.mrb[23].mxu1  ;;  %v2218_v54 = vpop.f32.mrb[25].mxu0  ;;  %v1178_v55 = vsel %vm642_vm5, %v1123_v45, -inf }
 0x65e   : > { %1179 = vmax.xlane.f32.xlu0 %v1178_v55  ;;  %v1175_v57 = vpop.f32.mrb[26].mxu0 }
 0x65f   : > { %v2219_v58 = vpop.f32.mrb[27].mxu0  ;;  %v1181_v59 = vsel %vm642_vm5, %v1173_v50, -inf }
 0x660   : > { %1182 = vmax.xlane.f32.xlu1 %v1181_v59 }
 0x671   : > { %1250 = vrot.lane.b32.xlu1 %v2890_v53, %s2600_s30 }
 0x675   : > { %1300 = vrot.lane.b32.xlu1 %v2862_v31, %s2601_s23 }
 0x679   : > { %1350 = vrot.lane.b32.xlu1 %v2864_v36, %s2601_s23 }
 0x67d   : > { %1348 = vrot.lane.b32.xlu1 %v2876_v47, %s2601_s23 }
 0x6eb   : > { %v1180_v60 = vpop.xlane.xlu0 %1179 }
 0x6ec   : > { %v1184_v61 = vsub.f32 %v1123_v45, %v1180_v60 }
 0x6ed   : > { %v1183_v62 = vpop.xlane.xlu1 %1182 }
 0x6ee   : > { %v1186_v63 = vmul.f32 1.442695, %v1184_v61  ;;  %v1185_v0 = vsub.f32 %v1173_v50, %v1183_v62 }
 0x6f0   : > { %2418 = vpow2.f32 %v1186_v63  ;;  %v1188_v1 = vmul.f32 1.442695, %v1185_v0 }
 0x6f1   : > { %v1251_v2 = vpop.permute.xlu1 %1250 }
 0x6f2   : > { %2420 = vpow2.f32 %v1188_v1  ;;  %v1256_v3 = vsel %vm762_vm6, %v1251_v2, 0 }
 0x6f3   : > { %2227 = vmatpush3.bf16.msra.mxu0 %v1256_v3 }
 0x6f4   : > { %2238 = vmatprep.subr.bf16.mxu0 %v2597_v8 }
 0x6f5   : > { %v1301_v11 = vpop.permute.xlu1 %1300 }
 0x6f9   : > { %v1351_v19 = vpop.permute.xlu1 %1350 }
 0x6fa   : > { %v2419_v31 = vpop.eup %2418  ;;  %v1356_v22 = vsel %vm642_vm5, %v1351_v19, 0 }
 0x6fb   : > { %v1190_v36 = vsel %vm642_vm5, %v2419_v31, 0.0 }
 0x6fc   : > { %v2421_v4 = vpop.eup %2420  ;;  %1191 = vadd.xlane.f32.xlu0 %v1190_v36 }
 0x6fd   : > { %v1193_v47 = vsel %vm642_vm5, %v2421_v4, 0.0  ;;  %v1349_v24 = vpop.permute.xlu1 %1348 }
 0x700   : > { %1194 = vadd.xlane.f32.xlu0 %v1193_v47 }
 0x716   : > { %1202 = vrot.lane.b32.xlu0 %v2888_v52, %s2600_s30 }
 0x71a   : > { %1298 = vrot.lane.b32.xlu0 %v2873_v41, %s2601_s23  ;;  %v1306_v41 = vsel %vm642_vm5, %v1301_v11, 0 }
 0x789   : > { %v1192_v5 = vpop.xlane.xlu0 %1191 }
 0x78a   : > { %2422 = vrcp.f32 %v1192_v5 }
 0x78d   : > { %v1195_v6 = vpop.xlane.xlu0 %1194 }
 0x78e   : > { %2424 = vrcp.f32 %v1195_v6 }
 0x791   : > { %v1203_v7 = vpop.permute.xlu0 %1202 }
 0x792   : > { %v1208_v9 = vsel %vm762_vm6, %v1203_v7, 0  ;;  %v2394_v7 = vld [vmem:[%s2797_s15] sm:$0xff]  }
 0x793   : > { %2221 = vmatpush3.bf16.msra.mxu1 %v1208_v9  ;;  %v2395_v9 = vld [vmem:[%s2797_s15 + $0x8] sm:$0xff]   ;;  %s3161_s15 = scalar_lea.vmem [#allocation7], %s2781_s22 }
 0x794   : > { %v2423_v10 = vpop.eup %2422  ;;  %2232 = vmatprep.subr.bf16.mxu1 %v2597_v8  ;;  %s3162_s19 = smov %s3161_s15 }
 0x795   : > { %v1198_v14 = vmul.f32 %v2423_v10, %v2419_v31  ;;  %v1299_v23 = vpop.permute.xlu0 %1298 }
 0x797   : > { %v1200_v15 = vpack.c.bf16 %v1198_v14, %v1198_v14 }
 0x798   : > { %v2425_v16 = vpop.eup %2424 }
 0x799   : > { %v1199_v17 = vmul.f32 %v2425_v16, %v2421_v4  ;;  %2223 = vmatmul.mubr.msk.bf16.vlgmr.msra.gmra.mrb[24].mxu1 %vm642_vm5, %v1200_v15 }
 0x79a   : > { %2234 = vmatprep.mubr.msk.bf16.mxu1 %vm2598_vm3, %v2597_v8 }
 0x79b   : > { %v1201_v21 = vpack.c.bf16 %v1199_v17, %v1199_v17 }
 0x79c   : > { %2233 = vmatpush3.bf16.xpose.msra.mxu1 %v1306_v41 }
 0x79d   : > { %2229 = vmatmul.mubr.msk.bf16.vlgmr.msra.gmra.mrb[28].mxu0 %vm642_vm5, %v1201_v21  ;;  %2244 = vmatprep.subr.bf16.mxu1 %v2597_v8 }
 0x79e   : > { %2239 = vmatpush3.bf16.xpose.msra.mxu0 %v1356_v22  ;;  %2240 = vmatprep.mubr.msk.bf16.mxu0 %vm2598_vm3, %v2597_v8 }
 0x79f   : > { %2250 = vmatprep.subr.bf16.mxu0 %v2597_v8 }
 0x7a3   : > { %2235 = vmatmul.mubr.msk.bf16.vlgmr.msra.gmra.mrb[28].mxu1 %vm642_vm5, %v1299_v23 }
 0x7a4   : > { %2246 = vmatprep.mubr.msk.bf16.mxu1 %vm2598_vm3, %v2597_v8 }
 0x7a5   : > { %2241 = vmatmul.mubr.msk.bf16.vlgmr.msra.gmra.mrb[32].mxu0 %vm642_vm5, %v1349_v24 }
 0x7a6   : > { %2252 = vmatprep.mubr.msk.bf16.mxu0 %vm2598_vm3, %v2597_v8 }
 0x86c   : > { %v1244_v25 = vpop.f32.mrb[24].mxu1 }
 0x86d   : > { %v2224_v26 = vpop.f32.mrb[25].mxu1 }
 0x86e   : > { %v1247_v27 = vpop.f32.mrb[26].mxu1 }
 0x86f   : > { %v2225_v28 = vpop.f32.mrb[27].mxu1 }
 0x870   : > { %v1292_v29 = vpop.f32.mrb[28].mxu0 }
 0x871   : > { %v2378_v32 = vpack.i.bf16 %v1292_v29, %v1244_v25  ;;  %v2230_v33 = vpop.f32.mrb[29].mxu0 }
 0x872   : > { %v1295_v34 = vpop.f32.mrb[30].mxu0 }
 0x873   : > { %v2231_v39 = vpop.f32.mrb[31].mxu0 }
 0x876   : > { %v1342_v42 = vpop.f32.mrb[28].mxu1 }
 0x877   : > { %v1343_v43 = vadd.f32 %v1342_v42, %v2898_v56  ;;  %v2236_v44 = vpop.f32.mrb[29].mxu1 }
 0x878   : > { %v1345_v45 = vpop.f32.mrb[30].mxu1  ;;  %v1392_v46 = vpop.f32.mrb[32].mxu0 }
 0x879   : > { %v1393_v48 = vadd.f32 %v1392_v46, %v2898_v56  ;;  %v2237_v49 = vpop.f32.mrb[31].mxu1  ;;  %v2242_v50 = vpop.f32.mrb[33].mxu0  ;;  %v1398_v51 = vsel %vm642_vm5, %v1343_v43, -inf  ;;  %v1557_v46 = vsub.s32 3, %v2853_v18 }
 0x87a   : > { %1399 = vmax.xlane.f32.xlu0 %v1398_v51  ;;  %v1395_v54 = vpop.f32.mrb[34].mxu0 }
 0x87b   : > { %v2243_v55 = vpop.f32.mrb[35].mxu0  ;;  %v1401_v57 = vsel %vm642_vm5, %v1393_v48, -inf }
 0x87c   : > { %1402 = vmax.xlane.f32.xlu1 %v1401_v57 }
 0x88d   : > { %1470 = vrot.lane.b32.xlu1 %v2890_v53, %s2601_s23 }
 0x891   : > { %2374 = vrot.lane.b32.xlu1 %v2373_v38, %s2602_s8 }
 0x895   : > { %2379 = vrot.lane.b32.xlu1 %v2378_v32, %s2603_s12 }
 0x907   : > { %v1400_v56 = vpop.xlane.xlu0 %1399 }
 0x908   : > { %v1404_v58 = vsub.f32 %v1343_v43, %v1400_v56 }
 0x909   : > { %v1403_v59 = vpop.xlane.xlu1 %1402 }
 0x90a   : > { %v1406_v60 = vmul.f32 1.442695, %v1404_v58  ;;  %v1405_v61 = vsub.f32 %v1393_v48, %v1403_v59  ;;  %v1558_v48 = vrot.slane %v2857_v20, %v1557_v46 }
 0x90c   : > { %2426 = vpow2.f32 %v1406_v60  ;;  %v1408_v62 = vmul.f32 1.442695, %v1405_v61 }
 0x90d   : > { %v1471_v63 = vpop.permute.xlu1 %1470 }
 0x90e   : > { %2428 = vpow2.f32 %v1408_v62  ;;  %v1476_v0 = vsel %vm762_vm6, %v1471_v63, 0 }
 0x90f   : > { %2251 = vmatpush3.bf16.msra.mxu0 %v1476_v0 }
 0x910   : > { %2264 = vmatprep.subr.bf16.mxu0 %v2597_v8 }
 0x911   : > { %v2375_v22 = vpop.permute.xlu1 %2374 }
 0x912   : > { %v2377_v24 = vunpack.i.h.bf16 %v2375_v22  ;;  %v2376_v25 = vunpack.i.l.bf16 %v2375_v22  ;;  %v2400_v22 = vld [vmem:[%s2808_s18 + $0x10] sm:$0xff]  }
 0x914   : > { %v1543_v29 = vsel %vm642_vm5, %v2930_v40, %v2377_v24  ;;  %v1542_v32 = vsel %vm642_vm5, %v2928_v35, %v2376_v25  ;;  %v2065_v24 = vld [vmem:[%s419_s11] ss:$0 sm:$0xff] }
 0x915   : > { %v2380_v23 = vpop.permute.xlu1 %2379 }
 0x916   : > { %v2427_v53 = vpop.eup %2426  ;;  %v2382_v26 = vunpack.i.h.bf16 %v2380_v23  ;;  %v2381_v27 = vunpack.i.l.bf16 %v2380_v23  ;;  %v2401_v23 = vld [vmem:[%s2808_s18 + $0x18] sm:$0xff]  }
 0x917   : > { %v1410_v30 = vsel %vm642_vm5, %v2427_v53, 0.0 }
 0x918   : > { %v2429_v37 = vpop.eup %2428  ;;  %1411 = vadd.xlane.f32.xlu0 %v1410_v30  ;;  %v1545_v39 = vsel %vm1544_vm7, %v1542_v32, %v2381_v27  ;;  %v1546_v42 = vsel %vm1544_vm7, %v1543_v29, %v2382_v26 }
 0x919   : > { %v1413_v38 = vsel %vm642_vm5, %v2429_v37, 0.0 }
 0x91c   : > { %1414 = vadd.xlane.f32.xlu0 %v1413_v38  ;;  %v2397_v38 = vld [vmem:[%s3162_s19 + $0x8] sm:$0xff]  }
 0x932   : > { %1422 = vrot.lane.b32.xlu0 %v2888_v52, %s2601_s23 }
 0x9a5   : > { %v1412_v1 = vpop.xlane.xlu0 %1411 }
 0x9a6   : > { %2430 = vrcp.f32 %v1412_v1 }
 0x9a9   : > { %v1415_v2 = vpop.xlane.xlu0 %1414 }
 0x9aa   : > { %2432 = vrcp.f32 %v1415_v2 }
 0x9ad   : > { %v1423_v3 = vpop.permute.xlu0 %1422 }
 0x9ae   : > { %v1428_v31 = vsel %vm762_vm6, %v1423_v3, 0 }
 0x9af   : > { %2245 = vmatpush3.bf16.msra.mxu1 %v1428_v31 }
 0x9b0   : > { %v2431_v36 = vpop.eup %2430  ;;  %2256 = vmatprep.subr.bf16.mxu1 %v2597_v8 }
 0x9b1   : > { %v1418_v4 = vmul.f32 %v2431_v36, %v2427_v53 }
 0x9b3   : > { %v1420_v47 = vpack.c.bf16 %v1418_v4, %v1418_v4 }
 0x9b4   : > { %v2433_v5 = vpop.eup %2432 }
 0x9b5   : > { %v1419_v6 = vmul.f32 %v2433_v5, %v2429_v37  ;;  %2247 = vmatmul.mubr.msk.bf16.vlgmr.msra.gmra.mrb[32].mxu1 %vm642_vm5, %v1420_v47  ;;  %v1646_v47 = vsub.s32 4, %v2853_v18 }
 0x9b6   : > { %2260 = vmatprep.mubr.msk.bf16.mxu1 %vm2598_vm3, %v2597_v8  ;;  %2257 = vmatpush3.bf16.msra.mxu1 %v2394_v7  ;;  %v1652_v7 = vsub.s32 5, %v2853_v18 }
 0x9b7   : > { %v1421_v52 = vpack.c.bf16 %v1419_v6, %v1419_v6  ;;  %2258 = vmatprep.subr.bf16.mxu1 %v2597_v8  ;;  %v1647_v6 = vrot.slane %v2857_v20, %v1646_v47 }
 0x9b9   : > { %2253 = vmatmul.mubr.msk.bf16.vlgmr.msra.gmra.mrb[36].mxu0 %vm642_vm5, %v1421_v52 }
 0x9ba   : > { %2268 = vmatprep.mubr.msk.bf16.mxu0 %vm2598_vm3, %v2597_v8  ;;  %2259 = vmatpush3.bf16.msra.mxu1 %v2395_v9 }
 0x9bb   : > { %2272 = vmatprep.subr.bf16.mxu1 %v2597_v8 }
 0xa88   : > { %v1464_v10 = vpop.f32.mrb[32].mxu1 }
 0xa89   : > { %v2248_v11 = vpop.f32.mrb[33].mxu1 }
 0xa8a   : > { %v1467_v14 = vpop.f32.mrb[34].mxu1 }
 0xa8b   : > { %v2249_v15 = vpop.f32.mrb[35].mxu1  ;;  %v1653_v14 = vrot.slane %v2857_v20, %v1652_v7 }
 0xa8c   : > { %v1512_v16 = vpop.f32.mrb[36].mxu0 }
 0xa8d   : > { %v2383_v17 = vpack.i.bf16 %v1512_v16, %v1464_v10  ;;  %v2254_v19 = vpop.f32.mrb[37].mxu0 }
 0xa8e   : > { %v1515_v41 = vpop.f32.mrb[38].mxu0 }
 0xa8f   : > { %2384 = vrot.lane.b32.xlu0 %v2383_v17, %s2604_s17  ;;  %v2255_v21 = vpop.f32.mrb[39].mxu0  ;;  %v2398_v41 = vld [vmem:[%s2808_s18] sm:$0xff]  }
 0xa90   : > { %v2399_v21 = vld [vmem:[%s2808_s18 + $0x8] sm:$0xff]  }
 0xb01   : > { %v2385_v28 = vpop.permute.xlu0 %2384 }
 0xb02   : > { %v2387_v33 = vunpack.i.h.bf16 %v2385_v28  ;;  %v2386_v34 = vunpack.i.l.bf16 %v2385_v28 }
 0xb04   : > { %v1549_v43 = vsel %vm1547_vm8, %v1546_v42, %v2387_v33  ;;  %v1548_v44 = vsel %vm1547_vm8, %v1545_v39, %v2386_v34 }
 0xb05   : > { %v1550_v45 = vpack.c.bf16 %v1549_v43, %v1548_v44 }
 0xb07   : > { %2261 = vmatmul.mubr.msk.bf16.vlgmr.msra.gmra.mrb[36].mxu1 %vm464_vm4, %v1550_v45 }
 0xb08   : > { %2280 = vmatprep.mubr.msk.bf16.mxu1 %vm2598_vm3, %v2597_v8  ;;  %2273 = vmatpush3.bf16.msra.mxu1 %v2398_v41 }
 0xb09   : > { %2274 = vmatprep.subr.bf16.mxu1 %v2597_v8 }
 0xb0c   : > { %2275 = vmatpush3.bf16.msra.mxu1 %v2399_v21 }
 0xb0d   : > { %2276 = vmatprep.subr.bf16.mxu1 %v2597_v8 }
 0xb10   : > { %2277 = vmatpush3.bf16.msra.mxu1 %v2400_v22 }
 0xb11   : > { %2278 = vmatprep.subr.bf16.mxu1 %v2597_v8 }
 0xb14   : > { %2279 = vmatpush3.bf16.msra.mxu1 %v2401_v23 }
 0xbda   : > { %v1608_v40 = vpop.f32.mrb[36].mxu1 }
 0xbdb   : > { %v1609_v49 = vadd.f32 %v1608_v40, %v1558_v48  ;;  %v2262_v50 = vpop.f32.mrb[37].mxu1 }
 0xbdc   : > { %v1611_v35 = vpop.f32.mrb[38].mxu1 }
 0xbdd   : > { %v1612_v51 = vadd.f32 %v1611_v35, %v1558_v48  ;;  %v2263_v54 = vpop.f32.mrb[39].mxu1  ;;  %v1615_v55 = vadd.f32 %v1609_v49, %v2830_v12  ;;  %v1745_v49 = vsub.s32 6, %v2853_v18 }
 0xbdf   : > { %v1617_v57 = vsel %vm464_vm4, %v1615_v55, 0.0  ;;  %v1616_v56 = vadd.f32 %v1612_v51, %v2832_v13  ;;  %v2396_v13 = vld [vmem:[%s3161_s15] sm:$0xff]   ;;  %v1746_v50 = vrot.slane %v2857_v20, %v1745_v49 }
 0xbe0   : > { %1618 = vadd.xlane.f32.xlu1 %v1617_v57  ;;  %2265 = vmatpush3.bf16.msra.mxu0 %v2396_v13 }
 0xbe1   : > { %v1620_v58 = vsel %vm464_vm4, %v1616_v56, 0.0  ;;  %2266 = vmatprep.subr.bf16.mxu0 %v2597_v8 }
 0xbe2   : > { %1621 = vadd.xlane.f32.xlu0 %v1620_v58 }
 0xbe4   : > { %2267 = vmatpush3.bf16.msra.mxu0 %v2397_v38 }
 0xc6d   : > { %v1619_v59 = vpop.xlane.xlu1 %1618 }
 0xc6e   : > { %v1624_v60 = vmul.f32 0.03125, %v1619_v59 }
 0xc6f   : > { %v1622_v61 = vpop.xlane.xlu0 %1621 }
 0xc70   : > { %v1626_v62 = vsub.f32 %v1615_v55, %v1624_v60  ;;  %v1625_v63 = vmul.f32 0.03125, %v1622_v61 }
 0xc72   : > { %v1627_v0 = vsub.f32 %v1616_v56, %v1625_v63  ;;  %v1628_v53 = vmul.f32 %v1626_v62, %v1626_v62 }
 0xc74   : > { %v1630_v30 = vsel %vm464_vm4, %v1628_v53, 0.0  ;;  %v1629_v12 = vmul.f32 %v1627_v0, %v1627_v0 }
 0xc75   : > { %1631 = vadd.xlane.f32.xlu0 %v1630_v30 }
 0xc76   : > { %v1633_v37 = vsel %vm464_vm4, %v1629_v12, 0.0 }
 0xc79   : > { %1634 = vadd.xlane.f32.xlu0 %v1633_v37 }
 0xd02   : > { %v1632_v1 = vpop.xlane.xlu0 %1631 }
 0xd03   : > { %v1636_v2 = vmul.f32 0.03125, %v1632_v1 }
 0xd05   : > { %v1638_v3 = vadd.f32 1e-05, %v1636_v2 }
 0xd06   : > { %v1635_v31 = vpop.xlane.xlu0 %1634 }
 0xd07   : > { %2434 = vrsqrt.f32 %v1638_v3  ;;  %v1637_v36 = vmul.f32 0.03125, %v1635_v31 }
 0xd09   : > { %v1639_v4 = vadd.f32 1e-05, %v1637_v36 }
 0xd0b   : > { %2436 = vrsqrt.f32 %v1639_v4 }
 0xd11   : > { %v2435_v5 = vpop.eup %2434 }
 0xd12   : > { %v1642_v52 = vmul.f32 %v2435_v5, %v1626_v62  ;;  %v1846_v5 = vsub.s32 7, %v2853_v18 }
 0xd14   : > { %v1648_v10 = vmul.f32 %v1647_v6, %v1642_v52 }
 0xd15   : > { %v2437_v9 = vpop.eup %2436 }
 0xd16   : > { %v1643_v11 = vmul.f32 %v2437_v9, %v1627_v0  ;;  %v1654_v16 = vadd.f32 %v1653_v14, %v1648_v10  ;;  %v2074_v10 = vld [vmem:[%s2813_s0 + $0x8] ss:$0 sm:$0xff] }
 0xd18   : > { %v1649_v15 = vmul.f32 %v1647_v6, %v1643_v11  ;;  %v1847_v6 = vrot.slane %v2857_v20, %v1846_v5 }
 0xd1a   : > { %v1655_v17 = vadd.f32 %v1653_v14, %v1649_v15 }
 0xd1c   : > { %v1656_v19 = vpack.c.bf16 %v1655_v17, %v1654_v16 }
 0xd1e   : > { %2269 = vmatmul.mubr.msk.bf16.vlgmr.msra.gmra.mrb[40].mxu0 %vm464_vm4, %v1656_v19 }
 0xdf1   : > { %v1717_v25 = vpop.f32.mrb[40].mxu0 }
 0xdf2   : > { %v1718_v26 = vadd.f32 %v2065_v24, %v1717_v25  ;;  %v2270_v27 = vpop.f32.mrb[41].mxu0 }
 0xdf3   : > { %v1720_v28 = vpop.f32.mrb[42].mxu0 }
 0xdf4   : > { %v1726_v29 = vmul.f32 0.70710677, %v1718_v26  ;;  %v1721_v32 = vadd.f32 %v2065_v24, %v1720_v28  ;;  %v2271_v33 = vpop.f32.mrb[43].mxu0  ;;  %v1724_v43 = vmul.f32 0.5, %v1718_v26 }
 0xdf6   : > { %2438 = verf.f32 %v1726_v29  ;;  %v1727_v34 = vmul.f32 0.70710677, %v1721_v32  ;;  %v1725_v44 = vmul.f32 0.5, %v1721_v32 }
 0xdf8   : > { %2440 = verf.f32 %v1727_v34 }
 0xe00   : > { %v2439_v39 = vpop.eup %2438 }
 0xe01   : > { %v1730_v42 = vadd.f32 1.0, %v2439_v39 }
 0xe02   : > { %v2441_v8 = vpop.eup %2440 }
 0xe03   : > { %v1731_v45 = vadd.f32 1.0, %v2441_v8  ;;  %v1732_v46 = vmul.f32 %v1730_v42, %v1724_v43 }
 0xe05   : > { %v1733_v48 = vmul.f32 %v1731_v45, %v1725_v44 }
 0xe07   : > { %v1734_v40 = vpack.c.bf16 %v1733_v48, %v1732_v46 }
 0xe09   : > { %2281 = vmatmul.mubr.msk.bf16.vlgmr.msra.gmra.mrb[40].mxu1 %vm1771_vm9, %v1734_v40 }
 0xedc   : > { %v1809_v35 = vpop.f32.mrb[40].mxu1 }
 0xedd   : > { %v1810_v51 = vadd.f32 %v1809_v35, %v1746_v50  ;;  %v2282_v54 = vpop.f32.mrb[41].mxu1 }
 0xede   : > { %v1812_v55 = vpop.f32.mrb[42].mxu1 }
 0xedf   : > { %v1813_v57 = vadd.f32 %v1812_v55, %v1746_v50  ;;  %v2283_v56 = vpop.f32.mrb[43].mxu1  ;;  %v1816_v58 = vadd.f32 %v1810_v51, %v1654_v16 }
 0xee1   : > { %v1818_v59 = vsel %vm464_vm4, %v1816_v58, 0.0  ;;  %v1817_v60 = vadd.f32 %v1813_v57, %v1655_v17 }
 0xee2   : > { %1819 = vadd.xlane.f32.xlu1 %v1818_v59 }
 0xee3   : > { %v1821_v61 = vsel %vm464_vm4, %v1817_v60, 0.0 }
 0xee4   : > { %1822 = vadd.xlane.f32.xlu0 %v1821_v61 }
 0xf6f   : > { %v1820_v62 = vpop.xlane.xlu1 %1819 }
 0xf70   : > { %v1824_v63 = vmul.f32 0.03125, %v1820_v62 }
 0xf71   : > { %v1823_v0 = vpop.xlane.xlu0 %1822 }
 0xf72   : > { %v1826_v53 = vsub.f32 %v1816_v58, %v1824_v63  ;;  %v1825_v30 = vmul.f32 0.03125, %v1823_v0 }
 0xf74   : > { %v1827_v12 = vsub.f32 %v1817_v60, %v1825_v30  ;;  %v1828_v37 = vmul.f32 %v1826_v53, %v1826_v53 }
 0xf76   : > { %v1830_v13 = vsel %vm464_vm4, %v1828_v37, 0.0  ;;  %v1829_v38 = vmul.f32 %v1827_v12, %v1827_v12 }
 0xf77   : > { %1831 = vadd.xlane.f32.xlu1 %v1830_v13 }
 0xf78   : > { %v1833_v1 = vsel %vm464_vm4, %v1829_v38, 0.0 }
 0xf79   : > { %1834 = vadd.xlane.f32.xlu0 %v1833_v1 }
0x1004   : > { %v1832_v2 = vpop.xlane.xlu1 %1831 }
0x1005   : > { %v1836_v3 = vmul.f32 0.03125, %v1832_v2 }
0x1006   : > { %v1835_v31 = vpop.xlane.xlu0 %1834 }
0x1007   : > { %v1838_v36 = vadd.f32 1e-05, %v1836_v3  ;;  %v1837_v4 = vmul.f32 0.03125, %v1835_v31 }
0x1009   : > { %2442 = vrsqrt.f32 %v1838_v36  ;;  %v1839_v47 = vadd.f32 1e-05, %v1837_v4 }
0x100b   : > { %2444 = vrsqrt.f32 %v1839_v47 }
0x1013   : > { %v2443_v52 = vpop.eup %2442 }
0x1014   : > { %v1842_v7 = vmul.f32 %v2443_v52, %v1826_v53 }
0x1015   : > { %v2445_v9 = vpop.eup %2444 }
0x1016   : > { %v1848_v11 = vmul.f32 %v1847_v6, %v1842_v7  ;;  %v1843_v14 = vmul.f32 %v2445_v9, %v1827_v12  ;;  %1861 = sbr.rel (%p2075_p1) target bundleno = 4127 (0x101f), region = 64 }
0x1018   : > { %v1854_v15 = vadd.f32 %v2074_v10, %v1848_v11  ;;  %v1849_v16 = vmul.f32 %v1847_v6, %v1843_v14 }
0x101a   : > { %1856 = vst.msk [vmem:[#allocation2] sm:$0xff] %vm464_vm4, %v1854_v15  ;;  %v1855_v17 = vadd.f32 %v2074_v10, %v1849_v16  ;;  %v1862_v19 = vpack.c.bf16 (!%p2075_p1), %v1854_v15, %v1854_v15 }
0x101c   : > { %1857 = vst.msk [vmem:[#allocation2 + $0x8] sm:$0xff] %vm464_vm4, %v1855_v17  ;;  %v1863_v18 = vpack.c.bf16 (!%p2075_p1), %v1855_v17, %v1855_v17 }
0x101d   : > { %1865 = vst.msk [vmem:[#allocation9] sm:$0xf] %vm1864_vm10, %v1862_v19 }
0x101e   : > { %1866 = vst.msk [vmem:[#allocation9 + $0x4] sm:$0xf] %vm1864_vm10, %v1863_v18 }
0x101f PF: > { %s3163_s0 = sadd.s32 4294967295, %s2588_s29   ;;  %s2605_s16 = smov [#allocation9]  }
0x1020   : > { %p3092_p5 = scmp.eq.s32.totalorder %s3163_s0, 1  ;;  %s1876_s20 = sshll.u32 %s2605_s16, 4  ;;  %s1877_s20 = int_to_ptr.vmem [resolvable:$true] %s1876_s20 }
0x1021   : > { %s2504_s13 = scalar_lea.vmem %s1877_s20, 128  ;;  %p2511_p11 = scmp.lt.s32.totalorder %s1877_s20, %s1877_s20 }
0x1022   : > { %p2505_p8 = scmp.ne.s32.totalorder %s1877_s20, %s2504_s13  ;;  %p2512_p13 = scmp.lt.s32.totalorder %s2504_s13, %s2504_s13 }
0x1024   : > { %p2506_p9 = pnand %p2505_p8, %p3092_p5  ;;  %p2513_p2 = por %p2512_p13, %p2511_p11 }
0x1026   : > { %p2507_p10 = pneg %p2506_p9 }
0x1028   : > { %p2514_p3 = pnand %p2513_p2, %p2507_p10 }
0x102a   : > { %2517 = shalt.err (!%p2514_p3)
}
0x102b   : > { %s2518_s24 = scalar_lea.hbm %s3143_s7, 128 }
0x102c   : > { %p2519_p12 = scmp.ne.s32.totalorder %s3143_s7, %s2518_s24  ;;  %p2524_p7 = scmp.lt.u32.totalorder %s2518_s24, %s3143_s7 }
0x102e   : > { %p2520_p0 = pnand %p2519_p12, %p3092_p5 }
0x1030   : > { %p2521_p6 = pneg %p2520_p0 }
0x1032   : > { %p2526_p4 = pnand %p2524_p7, %p2521_p6 }
0x1034   : > { %2529 = shalt.err (!%p2526_p4)
}
0x1035   : > { %s2606_s8 = smov 64   ;;  %s2607_s12 = smov 4  }
0x1036   : > { %2292 = dma.vmem_to_hbm [thread:$0]  (%p3092_p5), %s1877_s20, 128, %s3143_s7, [#allocation6], %s2606_s8, %s2606_s8, %s2607_s12  }
0x1037   : > { %2563 = dma.done.wait (%p3092_p5), [#allocation6], 128  }
0x1038   : > { %2565 = vsyncadd (%p3092_p5), [#allocation6], 4294967168 }
0x1039 PF: > { %s22_s29 = sadd.s32 1, %s2588_s29   ;;  %s3165_s24 = smov %s2572_s25 }
0x103a   : > { %p19_p1 = scmp.ge.s32.totalorder %s22_s29, 4   ;;  %s3166_s25 = smov %s2576_s26 }
0x103b   : > { %s3167_s26 = smov %s2733_s21  ;;  %s3168_s27 = smov %s2584_s28 }
0x103c   : > { %s3169_s28 = smov %s3171_s14  ;;  %21 = sbr.rel (!%p19_p1) target bundleno = 9 (0x9), region = 117 }
0x1043   :  { %1892 = vsyncpa [#allocation5], 1 }
0x1044   :  { %1894 = vsyncpa [#allocation5 + $0x1], 1 }
0x1045   :  { %1895 = vsyncpa [#allocation8], 1 }
0x1046   :  { %1897 = vsyncpa [#allocation8 + $0x1], 1 }
0x1047   :  { %1898 = vsyncpa [#allocation6], 1 }
0x1048   :  { %1900 = vsyncpa [#allocation6 + $0x1], 1 }

</bundles_post_ra>
